<compile_context>
chip_gen: v6e
topology: v6e:2x2x1
jax: 0.10.0
libtpu: 0.0.40
codegen_flags: <defaults>
</compile_context>

<pallas_src>
from functools import partial

import jax
import jax.numpy as jnp
from jax.experimental import pallas as pl
from jax.experimental.pallas import tpu as pltpu


def _round_up(x, m):
    return (x + m - 1) // m * m


def _pick_row_tile(n_pad):
    """Largest sublane-aligned row tile <= 256 that gives >= 2 grid steps (so the
    'parallel' axis can shard across v7x's 2 TensorCores); else the whole array."""
    for tm in (256, 128, 64, 32, 16):
        if n_pad % tm == 0 and n_pad // tm >= 2:
            return tm
    return n_pad


# ----------------------------------------------------------------------------------
# Call 1: grid-invariant feature transform  HW_r = H @ W_r  (streamed per relation)
# ----------------------------------------------------------------------------------
def feat_transform_kernel(h_ref, wrel_ref, wloop_ref, hwrel_ref, hwloop_ref,
                          *, n_rel, n_src, dp, rk_pad):
    """h_ref    : [n_src, dp]        bf16  node features (resident)
       wrel_ref : [dp, n_rel*dp]     bf16  per-relation weights, column-blocked
       wloop_ref: [dp, dp]           bf16  self-loop weight
       hwrel_ref: [rk_pad, dp]       bf16  out: row-stacked H @ W_r (+ zero tail)
       hwloop_ref:[n_src, dp]        f32   out: H @ W_loop (kept in f32; never hits MXU again)
    """
    h = h_ref[...]
    # Stream per relation: one [n_src, dp] x [dp, dp] MXU matmul, cast to bf16 and
    # store directly (lane-dense, sublane offsets are multiples of 16). Live f32
    # state is bounded to a single [n_src, dp] block.
    for r in range(n_rel):  # static, unrolled at trace time
        hwrel_ref[r * n_src:(r + 1) * n_src, :] = jnp.dot(
            h, wrel_ref[:, r * dp:(r + 1) * dp],
            preferred_element_type=jnp.float32,
        ).astype(hwrel_ref.dtype)
    tail = rk_pad - n_rel * n_src
    if tail > 0:  # zero the K-padding rows so the aggregation contraction is exact
        hwrel_ref[n_rel * n_src:, :] = jnp.zeros((tail, dp), hwrel_ref.dtype)
    # Self-loop transform in f32 (added, not aggregated, downstream).
    hwloop_ref[...] = jnp.dot(h, wloop_ref[...], preferred_element_type=jnp.float32)


def rgcn_feature_transform(h_pad, w_rel_flat, w_loop_pad, *, num_rels, rk_pad):
    n_pad, d_pad = h_pad.shape
    kernel = partial(feat_transform_kernel,
                     n_rel=num_rels, n_src=n_pad, dp=d_pad, rk_pad=rk_pad)
    return pl.pallas_call(
        kernel,
        out_shape=(
            jax.ShapeDtypeStruct((rk_pad, d_pad), jnp.bfloat16),  # HW stack (MXU input)
            jax.ShapeDtypeStruct((n_pad, d_pad), jnp.float32),    # H @ W_loop (f32)
        ),
        grid_spec=pltpu.PrefetchScalarGridSpec(
            num_scalar_prefetch=0,
            grid=(1,),
            in_specs=[
                pl.BlockSpec((n_pad, d_pad), lambda i: (0, 0)),
                pl.BlockSpec((d_pad, num_rels * d_pad), lambda i: (0, 0)),
                pl.BlockSpec((d_pad, d_pad), lambda i: (0, 0)),
            ],
            out_specs=(
                pl.BlockSpec((rk_pad, d_pad), lambda i: (0, 0)),
                pl.BlockSpec((n_pad, d_pad), lambda i: (0, 0)),
            ),
        ),
        compiler_params=pltpu.CompilerParams(dimension_semantics=("arbitrary",)),
    )(h_pad, w_rel_flat, w_loop_pad)


# ----------------------------------------------------------------------------------
# Call 2: aggregation  out = relu( inv_deg * (A_cat @ HW) + H@W_loop + bias )
# ----------------------------------------------------------------------------------
def agg_kernel(a_ref, hwrel_ref, hwloop_ref, invdeg_ref, b_ref, o_ref):
    """a_ref     : [tm, rk_pad]   bf16  exact edge-count adjacency rows (relation-blocked K)
       hwrel_ref : [rk_pad, dp]   bf16  row-stacked H @ W_r (resident)
       hwloop_ref: [tm, dp]       f32   H @ W_loop rows
       invdeg_ref: [tm, 1]        f32   1 / in-degree (0 for isolated nodes)
       b_ref     : [1, dp]        f32   bias (resident)
       o_ref     : [tm, dp]       f32   output rows
    """
    agg = jnp.dot(a_ref[...], hwrel_ref[...], preferred_element_type=jnp.float32)
    out = agg * invdeg_ref[...] + hwloop_ref[...] + b_ref[...]
    # dropout prob is 0 -> identity; single lane-dense store.
    o_ref[...] = jnp.maximum(out, 0.0).astype(o_ref.dtype)


def rgcn_aggregate(a_cat, hw_rel, hw_loop, inv_deg, bias_pad):
    n_pad, rk_pad = a_cat.shape
    d_pad = hw_rel.shape[1]
    tm = _pick_row_tile(n_pad)
    grid = (n_pad // tm,)

    # Advisory cost for XLA scheduling around the custom call.
    flops = 2 * n_pad * rk_pad * d_pad + 4 * n_pad * d_pad
    bytes_accessed = (a_cat.size * 2 + hw_rel.size * 2 + hw_loop.size * 4
                      + inv_deg.size * 4 + bias_pad.size * 4 + n_pad * d_pad * 4)

    return pl.pallas_call(
        agg_kernel,
        out_shape=jax.ShapeDtypeStruct((n_pad, d_pad), jnp.float32),
        grid_spec=pltpu.PrefetchScalarGridSpec(
            num_scalar_prefetch=0,
            grid=grid,
            in_specs=[
                pl.BlockSpec((tm, rk_pad), lambda i: (i, 0)),     # A_cat row tile (bf16)
                pl.BlockSpec((rk_pad, d_pad), lambda i: (0, 0)),  # HW stack, resident (bf16)
                pl.BlockSpec((tm, d_pad), lambda i: (i, 0)),      # self-loop rows (f32)
                pl.BlockSpec((tm, 1), lambda i: (i, 0)),          # inv_deg rows (f32)
                pl.BlockSpec((1, d_pad), lambda i: (0, 0)),       # bias, resident (f32)
            ],
            out_specs=pl.BlockSpec((tm, d_pad), lambda i: (i, 0)),
        ),
        compiler_params=pltpu.CompilerParams(
            dimension_semantics=("parallel",),  # independent output-row tiles
        ),
        cost_estimate=pl.CostEstimate(flops=flops, transcendentals=0,
                                      bytes_accessed=bytes_accessed),
    )(a_cat, hw_rel, hw_loop, inv_deg, bias_pad)


# ----------------------------------------------------------------------------------
# Host-side layout plumbing
# ----------------------------------------------------------------------------------
def prepare_rgcn_operands(h, src, dst, rel, params):
    """Dense exact edge-count adjacency (relation-blocked, un-normalized), flattened
    relation weights, padded features; 1/deg kept as a separate f32 vector."""
    w, w_loop, bias = params["W"], params["W_loop"], params["bias"]
    num_rels, d, _ = w.shape
    n = h.shape[0]
    n_pad = _round_up(n, 16)                     # bf16 packs 16 sublanes per vreg
    d_pad = _round_up(d, 128)                    # lane-dense feature dim
    rk = num_rels * n_pad
    rk_pad = _round_up(rk, 128)                  # unmasked lane loads of A_cat K axis

    # A[r, v, u] = # edges u->v with relation r  (exact small integers, exact in bf16)
    a = jnp.zeros((num_rels, n_pad, n_pad), jnp.float32).at[rel, dst, src].add(1.0)
    deg = a.sum(axis=(0, 2))                     # total in-degree per destination node
    inv_deg = jnp.where(deg > 0, 1.0 / jnp.where(deg > 0, deg, 1.0), 0.0)
    # A_cat[v, r*n_pad + u] = A[r, v, u] -> contraction axis ordered (relation, source)
    a_cat = a.transpose(1, 0, 2).reshape(n_pad, rk)
    a_cat = jnp.pad(a_cat, ((0, 0), (0, rk_pad - rk))).astype(jnp.bfloat16)

    # W_flat[k, r*d_pad + e] = W_r[k, e]  (zero-padded D -> d_pad on both dims)
    w_pad = jnp.pad(w, ((0, 0), (0, d_pad - d), (0, d_pad - d)))
    w_rel_flat = (w_pad.transpose(1, 0, 2)
                  .reshape(d_pad, num_rels * d_pad).astype(jnp.bfloat16))
    w_loop_pad = jnp.pad(w_loop, ((0, d_pad - d), (0, d_pad - d))).astype(jnp.bfloat16)

    h_pad = jnp.pad(h, ((0, n_pad - n), (0, d_pad - d))).astype(jnp.bfloat16)
    bias_pad = jnp.pad(bias.reshape(1, d), ((0, 0), (0, d_pad - d))).astype(jnp.float32)
    inv_deg = inv_deg.reshape(n_pad, 1).astype(jnp.float32)

    dims = dict(n=n, d=d, n_pad=n_pad, d_pad=d_pad, num_rels=num_rels, rk_pad=rk_pad)
    return a_cat, h_pad, w_rel_flat, w_loop_pad, bias_pad, inv_deg, dims


def rgcn_forward(h, src, dst, rel, params, skip=False):
    """Equivalent of RGCN.forward with step=0: one RelGraphConv layer.
       h_out[v] = relu( mean_{e: dst(e)=v}( h[src(e)] @ W[rel(e)] ) + h[v] @ W_loop + bias )."""
    (a_cat, h_pad, w_rel_flat, w_loop_pad, bias_pad, inv_deg,
     dims) = prepare_rgcn_operands(h, src, dst, rel, params)
    hw_rel, hw_loop = rgcn_feature_transform(
        h_pad, w_rel_flat, w_loop_pad,
        num_rels=dims["num_rels"], rk_pad=dims["rk_pad"])
    out_pad = rgcn_aggregate(a_cat, hw_rel, hw_loop, inv_deg, bias_pad)
    h_new = out_pad[:dims["n"], :dims["d"]]
    if skip:
        h_new = (h_new + h) / 2.0
    return h_new


if __name__ == "__main__":
    key = jax.random.PRNGKey(0)

    # Small shapes consistent with the module.
    hdim = 32
    num_rels = 24
    num_nodes = 16
    num_edges = 48

    k_h, k_w, k_wl, k_b, k_src, k_dst, k_rel = jax.random.split(key, 7)

    # Graph: node features, edge endpoints, edge relation ids (g.edata['id']).
    h = jax.random.normal(k_h, (num_nodes, hdim), dtype=jnp.float32)
    src = jax.random.randint(k_src, (num_edges,), 0, num_nodes)
    dst = jax.random.randint(k_dst, (num_edges,), 0, num_nodes)
    rel = jax.random.randint(k_rel, (num_edges,), 0, num_rels)

    # Deterministic parameter init (per-relation weight, self-loop weight, bias).
    scale = 1.0 / (hdim ** 0.5)
    params = {
        "W": jax.random.normal(k_w, (num_rels, hdim, hdim), dtype=jnp.float32) * scale,
        "W_loop": jax.random.normal(k_wl, (hdim, hdim), dtype=jnp.float32) * scale,
        "bias": jax.random.normal(k_b, (1, hdim), dtype=jnp.float32) * 0.01,
    }

    out = jax.block_until_ready(rgcn_forward(h, src, dst, rel, params, skip=False))

    # --- Reference 1 (tight): pure-JAX mirror of the two-kernel bf16 formulation ----
    (a_cat, h_pad, w_rel_flat, w_loop_pad, bias_pad, inv_deg,
     dims) = prepare_rgcn_operands(h, src, dst, rel, params)
    n, d = dims["n"], dims["d"]
    n_pad, d_pad, rk_pad, R = dims["n_pad"], dims["d_pad"], dims["rk_pad"], dims["num_rels"]
    blocks = [
        jnp.dot(h_pad, w_rel_flat[:, r * d_pad:(r + 1) * d_pad],
                preferred_element_type=jnp.float32).astype(jnp.bfloat16)
        for r in range(R)
    ]
    hw_stack = jnp.concatenate(blocks, axis=0)
    hw_stack = jnp.pad(hw_stack, ((0, rk_pad - R * n_pad), (0, 0)))
    hw_loop_ref = jnp.dot(h_pad, w_loop_pad, preferred_element_type=jnp.float32)
    agg = jnp.dot(a_cat, hw_stack, preferred_element_type=jnp.float32)
    ref_bf16 = jnp.maximum(agg * inv_deg + hw_loop_ref + bias_pad, 0.0)[:n, :d]
    assert jnp.allclose(out, ref_bf16, atol=2e-3, rtol=2e-3), "mismatch vs bf16-mirrored ref"

    # --- Reference 2 (semantic, loose tol for bf16 inputs): f32 edge scatter-mean ---
    msgs = jnp.einsum("ed,edf->ef", h[src], params["W"][rel])
    summed = jnp.zeros((num_nodes, hdim), jnp.float32).at[dst].add(msgs)
    deg = jnp.zeros((num_nodes,), jnp.float32).at[dst].add(1.0)
    agg_ref = jnp.where(deg[:, None] > 0,
                        summed / jnp.where(deg[:, None] > 0, deg[:, None], 1.0), 0.0)
    ref_f32 = jnp.maximum(agg_ref + h @ params["W_loop"] + params["bias"], 0.0)
    assert jnp.allclose(out, ref_f32, atol=8e-2, rtol=8e-2), "mismatch vs f32 edge reference"

    print("KERNEL_OK")
</pallas_src>

<mosaic_0001>
module attributes {stable_mosaic.version = 11 : i64} {
  func.func @feat_transform_kernel(%arg0: i32, %arg1: memref<16x128xbf16, #tpu.memory_space<vmem>>, %arg2: memref<128x3072xbf16, #tpu.memory_space<vmem>>, %arg3: memref<128x128xbf16, #tpu.memory_space<vmem>>, %arg4: memref<384x128xbf16, #tpu.memory_space<vmem>>, %arg5: memref<16x128xf32, #tpu.memory_space<vmem>>) attributes {dimension_semantics = [#tpu.dimension_semantics<arbitrary>], iteration_bounds = array<i64: 1>, scalar_prefetch = 0 : i64, scratch_operands = 0 : i64, tpu.core_type = #tpu.core_type<tc>, window_params = [{pipeline_mode = #tpu.pipeline_mode<synchronous>, transform_indices = @transform_0, window_bounds = array<i64: 16, 128>}, {pipeline_mode = #tpu.pipeline_mode<synchronous>, transform_indices = @transform_1, window_bounds = array<i64: 128, 3072>}, {pipeline_mode = #tpu.pipeline_mode<synchronous>, transform_indices = @transform_2, window_bounds = array<i64: 128, 128>}, {pipeline_mode = #tpu.pipeline_mode<synchronous>, transform_indices = @transform_3, window_bounds = array<i64: 384, 128>}, {pipeline_mode = #tpu.pipeline_mode<synchronous>, transform_indices = @transform_4, window_bounds = array<i64: 16, 128>}]} {
    %c0 = arith.constant 0 : index
    %c0_0 = arith.constant 0 : index
    %0 = vector.load %arg1[%c0, %c0_0] : memref<16x128xbf16, #tpu.memory_space<vmem>>, vector<16x128xbf16>
    %c0_1 = arith.constant 0 : index
    %c0_2 = arith.constant 0 : index
    %1 = vector.load %arg2[%c0_1, %c0_2] : memref<128x3072xbf16, #tpu.memory_space<vmem>>, vector<128x128xbf16>
    %cst = arith.constant dense<0.000000e+00> : vector<16x128xf32>
    %2 = tpu.matmul %0, %1, %cst {dimension_numbers = #tpu.dot_dimension_numbers<[1], [0], [0], [1], [0, 0, 1, 1], [], []>} : vector<16x128xbf16>, vector<128x128xbf16>, vector<16x128xf32> -> vector<16x128xf32>
    %3 = arith.truncf %2 : vector<16x128xf32> to vector<16x128xbf16>
    %c0_3 = arith.constant 0 : index
    %c0_4 = arith.constant 0 : index
    %4 = vector.load %arg4[%c0_3, %c0_4] : memref<384x128xbf16, #tpu.memory_space<vmem>>, vector<16x128xbf16>
    tpu.vector_store %arg4[%c0_3, %c0_4], %3 {strides = array<i32>} : memref<384x128xbf16, #tpu.memory_space<vmem>>, vector<16x128xbf16>,
    %c0_5 = arith.constant 0 : index
    %c128 = arith.constant 128 : index
    %5 = vector.load %arg2[%c0_5, %c128] : memref<128x3072xbf16, #tpu.memory_space<vmem>>, vector<128x128xbf16>
    %cst_6 = arith.constant dense<0.000000e+00> : vector<16x128xf32>
    %6 = tpu.matmul %0, %5, %cst_6 {dimension_numbers = #tpu.dot_dimension_numbers<[1], [0], [0], [1], [0, 0, 1, 1], [], []>} : vector<16x128xbf16>, vector<128x128xbf16>, vector<16x128xf32> -> vector<16x128xf32>
    %7 = arith.truncf %6 : vector<16x128xf32> to vector<16x128xbf16>
    %c16 = arith.constant 16 : index
    %c0_7 = arith.constant 0 : index
    %8 = vector.load %arg4[%c16, %c0_7] : memref<384x128xbf16, #tpu.memory_space<vmem>>, vector<16x128xbf16>
    tpu.vector_store %arg4[%c16, %c0_7], %7 {strides = array<i32>} : memref<384x128xbf16, #tpu.memory_space<vmem>>, vector<16x128xbf16>,
    %c0_8 = arith.constant 0 : index
    %c256 = arith.constant 256 : index
    %9 = vector.load %arg2[%c0_8, %c256] : memref<128x3072xbf16, #tpu.memory_space<vmem>>, vector<128x128xbf16>
    %cst_9 = arith.constant dense<0.000000e+00> : vector<16x128xf32>
    %10 = tpu.matmul %0, %9, %cst_9 {dimension_numbers = #tpu.dot_dimension_numbers<[1], [0], [0], [1], [0, 0, 1, 1], [], []>} : vector<16x128xbf16>, vector<128x128xbf16>, vector<16x128xf32> -> vector<16x128xf32>
    %11 = arith.truncf %10 : vector<16x128xf32> to vector<16x128xbf16>
    %c32 = arith.constant 32 : index
    %c0_10 = arith.constant 0 : index
    %12 = vector.load %arg4[%c32, %c0_10] : memref<384x128xbf16, #tpu.memory_space<vmem>>, vector<16x128xbf16>
    tpu.vector_store %arg4[%c32, %c0_10], %11 {strides = array<i32>} : memref<384x128xbf16, #tpu.memory_space<vmem>>, vector<16x128xbf16>,
    %c0_11 = arith.constant 0 : index
    %c384 = arith.constant 384 : index
    %13 = vector.load %arg2[%c0_11, %c384] : memref<128x3072xbf16, #tpu.memory_space<vmem>>, vector<128x128xbf16>
    %cst_12 = arith.constant dense<0.000000e+00> : vector<16x128xf32>
    %14 = tpu.matmul %0, %13, %cst_12 {dimension_numbers = #tpu.dot_dimension_numbers<[1], [0], [0], [1], [0, 0, 1, 1], [], []>} : vector<16x128xbf16>, vector<128x128xbf16>, vector<16x128xf32> -> vector<16x128xf32>
    %15 = arith.truncf %14 : vector<16x128xf32> to vector<16x128xbf16>
    %c48 = arith.constant 48 : index
    %c0_13 = arith.constant 0 : index
    %16 = vector.load %arg4[%c48, %c0_13] : memref<384x128xbf16, #tpu.memory_space<vmem>>, vector<16x128xbf16>
    tpu.vector_store %arg4[%c48, %c0_13], %15 {strides = array<i32>} : memref<384x128xbf16, #tpu.memory_space<vmem>>, vector<16x128xbf16>,
    %c0_14 = arith.constant 0 : index
    %c512 = arith.constant 512 : index
    %17 = vector.load %arg2[%c0_14, %c512] : memref<128x3072xbf16, #tpu.memory_space<vmem>>, vector<128x128xbf16>
    %cst_15 = arith.constant dense<0.000000e+00> : vector<16x128xf32>
    %18 = tpu.matmul %0, %17, %cst_15 {dimension_numbers = #tpu.dot_dimension_numbers<[1], [0], [0], [1], [0, 0, 1, 1], [], []>} : vector<16x128xbf16>, vector<128x128xbf16>, vector<16x128xf32> -> vector<16x128xf32>
    %19 = arith.truncf %18 : vector<16x128xf32> to vector<16x128xbf16>
    %c64 = arith.constant 64 : index
    %c0_16 = arith.constant 0 : index
    %20 = vector.load %arg4[%c64, %c0_16] : memref<384x128xbf16, #tpu.memory_space<vmem>>, vector<16x128xbf16>
    tpu.vector_store %arg4[%c64, %c0_16], %19 {strides = array<i32>} : memref<384x128xbf16, #tpu.memory_space<vmem>>, vector<16x128xbf16>,
    %c0_17 = arith.constant 0 : index
    %c640 = arith.constant 640 : index
    %21 = vector.load %arg2[%c0_17, %c640] : memref<128x3072xbf16, #tpu.memory_space<vmem>>, vector<128x128xbf16>
    %cst_18 = arith.constant dense<0.000000e+00> : vector<16x128xf32>
    %22 = tpu.matmul %0, %21, %cst_18 {dimension_numbers = #tpu.dot_dimension_numbers<[1], [0], [0], [1], [0, 0, 1, 1], [], []>} : vector<16x128xbf16>, vector<128x128xbf16>, vector<16x128xf32> -> vector<16x128xf32>
    %23 = arith.truncf %22 : vector<16x128xf32> to vector<16x128xbf16>
    %c80 = arith.constant 80 : index
    %c0_19 = arith.constant 0 : index
    %24 = vector.load %arg4[%c80, %c0_19] : memref<384x128xbf16, #tpu.memory_space<vmem>>, vector<16x128xbf16>
    tpu.vector_store %arg4[%c80, %c0_19], %23 {strides = array<i32>} : memref<384x128xbf16, #tpu.memory_space<vmem>>, vector<16x128xbf16>,
    %c0_20 = arith.constant 0 : index
    %c768 = arith.constant 768 : index
    %25 = vector.load %arg2[%c0_20, %c768] : memref<128x3072xbf16, #tpu.memory_space<vmem>>, vector<128x128xbf16>
    %cst_21 = arith.constant dense<0.000000e+00> : vector<16x128xf32>
    %26 = tpu.matmul %0, %25, %cst_21 {dimension_numbers = #tpu.dot_dimension_numbers<[1], [0], [0], [1], [0, 0, 1, 1], [], []>} : vector<16x128xbf16>, vector<128x128xbf16>, vector<16x128xf32> -> vector<16x128xf32>
    %27 = arith.truncf %26 : vector<16x128xf32> to vector<16x128xbf16>
    %c96 = arith.constant 96 : index
    %c0_22 = arith.constant 0 : index
    %28 = vector.load %arg4[%c96, %c0_22] : memref<384x128xbf16, #tpu.memory_space<vmem>>, vector<16x128xbf16>
    tpu.vector_store %arg4[%c96, %c0_22], %27 {strides = array<i32>} : memref<384x128xbf16, #tpu.memory_space<vmem>>, vector<16x128xbf16>,
    %c0_23 = arith.constant 0 : index
    %c896 = arith.constant 896 : index
    %29 = vector.load %arg2[%c0_23, %c896] : memref<128x3072xbf16, #tpu.memory_space<vmem>>, vector<128x128xbf16>
    %cst_24 = arith.constant dense<0.000000e+00> : vector<16x128xf32>
    %30 = tpu.matmul %0, %29, %cst_24 {dimension_numbers = #tpu.dot_dimension_numbers<[1], [0], [0], [1], [0, 0, 1, 1], [], []>} : vector<16x128xbf16>, vector<128x128xbf16>, vector<16x128xf32> -> vector<16x128xf32>
    %31 = arith.truncf %30 : vector<16x128xf32> to vector<16x128xbf16>
    %c112 = arith.constant 112 : index
    %c0_25 = arith.constant 0 : index
    %32 = vector.load %arg4[%c112, %c0_25] : memref<384x128xbf16, #tpu.memory_space<vmem>>, vector<16x128xbf16>
    tpu.vector_store %arg4[%c112, %c0_25], %31 {strides = array<i32>} : memref<384x128xbf16, #tpu.memory_space<vmem>>, vector<16x128xbf16>,
    %c0_26 = arith.constant 0 : index
    %c1024 = arith.constant 1024 : index
    %33 = vector.load %arg2[%c0_26, %c1024] : memref<128x3072xbf16, #tpu.memory_space<vmem>>, vector<128x128xbf16>
    %cst_27 = arith.constant dense<0.000000e+00> : vector<16x128xf32>
    %34 = tpu.matmul %0, %33, %cst_27 {dimension_numbers = #tpu.dot_dimension_numbers<[1], [0], [0], [1], [0, 0, 1, 1], [], []>} : vector<16x128xbf16>, vector<128x128xbf16>, vector<16x128xf32> -> vector<16x128xf32>
    %35 = arith.truncf %34 : vector<16x128xf32> to vector<16x128xbf16>
    %c128_28 = arith.constant 128 : index
    %c0_29 = arith.constant 0 : index
    %36 = vector.load %arg4[%c128_28, %c0_29] : memref<384x128xbf16, #tpu.memory_space<vmem>>, vector<16x128xbf16>
    tpu.vector_store %arg4[%c128_28, %c0_29], %35 {strides = array<i32>} : memref<384x128xbf16, #tpu.memory_space<vmem>>, vector<16x128xbf16>,
    %c0_30 = arith.constant 0 : index
    %c1152 = arith.constant 1152 : index
    %37 = vector.load %arg2[%c0_30, %c1152] : memref<128x3072xbf16, #tpu.memory_space<vmem>>, vector<128x128xbf16>
    %cst_31 = arith.constant dense<0.000000e+00> : vector<16x128xf32>
    %38 = tpu.matmul %0, %37, %cst_31 {dimension_numbers = #tpu.dot_dimension_numbers<[1], [0], [0], [1], [0, 0, 1, 1], [], []>} : vector<16x128xbf16>, vector<128x128xbf16>, vector<16x128xf32> -> vector<16x128xf32>
    %39 = arith.truncf %38 : vector<16x128xf32> to vector<16x128xbf16>
    %c144 = arith.constant 144 : index
    %c0_32 = arith.constant 0 : index
    %40 = vector.load %arg4[%c144, %c0_32] : memref<384x128xbf16, #tpu.memory_space<vmem>>, vector<16x128xbf16>
    tpu.vector_store %arg4[%c144, %c0_32], %39 {strides = array<i32>} : memref<384x128xbf16, #tpu.memory_space<vmem>>, vector<16x128xbf16>,
    %c0_33 = arith.constant 0 : index
    %c1280 = arith.constant 1280 : index
    %41 = vector.load %arg2[%c0_33, %c1280] : memref<128x3072xbf16, #tpu.memory_space<vmem>>, vector<128x128xbf16>
    %cst_34 = arith.constant dense<0.000000e+00> : vector<16x128xf32>
    %42 = tpu.matmul %0, %41, %cst_34 {dimension_numbers = #tpu.dot_dimension_numbers<[1], [0], [0], [1], [0, 0, 1, 1], [], []>} : vector<16x128xbf16>, vector<128x128xbf16>, vector<16x128xf32> -> vector<16x128xf32>
    %43 = arith.truncf %42 : vector<16x128xf32> to vector<16x128xbf16>
    %c160 = arith.constant 160 : index
    %c0_35 = arith.constant 0 : index
    %44 = vector.load %arg4[%c160, %c0_35] : memref<384x128xbf16, #tpu.memory_space<vmem>>, vector<16x128xbf16>
    tpu.vector_store %arg4[%c160, %c0_35], %43 {strides = array<i32>} : memref<384x128xbf16, #tpu.memory_space<vmem>>, vector<16x128xbf16>,
    %c0_36 = arith.constant 0 : index
    %c1408 = arith.constant 1408 : index
    %45 = vector.load %arg2[%c0_36, %c1408] : memref<128x3072xbf16, #tpu.memory_space<vmem>>, vector<128x128xbf16>
    %cst_37 = arith.constant dense<0.000000e+00> : vector<16x128xf32>
    %46 = tpu.matmul %0, %45, %cst_37 {dimension_numbers = #tpu.dot_dimension_numbers<[1], [0], [0], [1], [0, 0, 1, 1], [], []>} : vector<16x128xbf16>, vector<128x128xbf16>, vector<16x128xf32> -> vector<16x128xf32>
    %47 = arith.truncf %46 : vector<16x128xf32> to vector<16x128xbf16>
    %c176 = arith.constant 176 : index
    %c0_38 = arith.constant 0 : index
    %48 = vector.load %arg4[%c176, %c0_38] : memref<384x128xbf16, #tpu.memory_space<vmem>>, vector<16x128xbf16>
    tpu.vector_store %arg4[%c176, %c0_38], %47 {strides = array<i32>} : memref<384x128xbf16, #tpu.memory_space<vmem>>, vector<16x128xbf16>,
    %c0_39 = arith.constant 0 : index
    %c1536 = arith.constant 1536 : index
    %49 = vector.load %arg2[%c0_39, %c1536] : memref<128x3072xbf16, #tpu.memory_space<vmem>>, vector<128x128xbf16>
    %cst_40 = arith.constant dense<0.000000e+00> : vector<16x128xf32>
    %50 = tpu.matmul %0, %49, %cst_40 {dimension_numbers = #tpu.dot_dimension_numbers<[1], [0], [0], [1], [0, 0, 1, 1], [], []>} : vector<16x128xbf16>, vector<128x128xbf16>, vector<16x128xf32> -> vector<16x128xf32>
    %51 = arith.truncf %50 : vector<16x128xf32> to vector<16x128xbf16>
    %c192 = arith.constant 192 : index
    %c0_41 = arith.constant 0 : index
    %52 = vector.load %arg4[%c192, %c0_41] : memref<384x128xbf16, #tpu.memory_space<vmem>>, vector<16x128xbf16>
    tpu.vector_store %arg4[%c192, %c0_41], %51 {strides = array<i32>} : memref<384x128xbf16, #tpu.memory_space<vmem>>, vector<16x128xbf16>,
    %c0_42 = arith.constant 0 : index
    %c1664 = arith.constant 1664 : index
    %53 = vector.load %arg2[%c0_42, %c1664] : memref<128x3072xbf16, #tpu.memory_space<vmem>>, vector<128x128xbf16>
    %cst_43 = arith.constant dense<0.000000e+00> : vector<16x128xf32>
    %54 = tpu.matmul %0, %53, %cst_43 {dimension_numbers = #tpu.dot_dimension_numbers<[1], [0], [0], [1], [0, 0, 1, 1], [], []>} : vector<16x128xbf16>, vector<128x128xbf16>, vector<16x128xf32> -> vector<16x128xf32>
    %55 = arith.truncf %54 : vector<16x128xf32> to vector<16x128xbf16>
    %c208 = arith.constant 208 : index
    %c0_44 = arith.constant 0 : index
    %56 = vector.load %arg4[%c208, %c0_44] : memref<384x128xbf16, #tpu.memory_space<vmem>>, vector<16x128xbf16>
    tpu.vector_store %arg4[%c208, %c0_44], %55 {strides = array<i32>} : memref<384x128xbf16, #tpu.memory_space<vmem>>, vector<16x128xbf16>,
    %c0_45 = arith.constant 0 : index
    %c1792 = arith.constant 1792 : index
    %57 = vector.load %arg2[%c0_45, %c1792] : memref<128x3072xbf16, #tpu.memory_space<vmem>>, vector<128x128xbf16>
    %cst_46 = arith.constant dense<0.000000e+00> : vector<16x128xf32>
    %58 = tpu.matmul %0, %57, %cst_46 {dimension_numbers = #tpu.dot_dimension_numbers<[1], [0], [0], [1], [0, 0, 1, 1], [], []>} : vector<16x128xbf16>, vector<128x128xbf16>, vector<16x128xf32> -> vector<16x128xf32>
    %59 = arith.truncf %58 : vector<16x128xf32> to vector<16x128xbf16>
    %c224 = arith.constant 224 : index
    %c0_47 = arith.constant 0 : index
    %60 = vector.load %arg4[%c224, %c0_47] : memref<384x128xbf16, #tpu.memory_space<vmem>>, vector<16x128xbf16>
    tpu.vector_store %arg4[%c224, %c0_47], %59 {strides = array<i32>} : memref<384x128xbf16, #tpu.memory_space<vmem>>, vector<16x128xbf16>,
    %c0_48 = arith.constant 0 : index
    %c1920 = arith.constant 1920 : index
    %61 = vector.load %arg2[%c0_48, %c1920] : memref<128x3072xbf16, #tpu.memory_space<vmem>>, vector<128x128xbf16>
    %cst_49 = arith.constant dense<0.000000e+00> : vector<16x128xf32>
    %62 = tpu.matmul %0, %61, %cst_49 {dimension_numbers = #tpu.dot_dimension_numbers<[1], [0], [0], [1], [0, 0, 1, 1], [], []>} : vector<16x128xbf16>, vector<128x128xbf16>, vector<16x128xf32> -> vector<16x128xf32>
    %63 = arith.truncf %62 : vector<16x128xf32> to vector<16x128xbf16>
    %c240 = arith.constant 240 : index
    %c0_50 = arith.constant 0 : index
    %64 = vector.load %arg4[%c240, %c0_50] : memref<384x128xbf16, #tpu.memory_space<vmem>>, vector<16x128xbf16>
    tpu.vector_store %arg4[%c240, %c0_50], %63 {strides = array<i32>} : memref<384x128xbf16, #tpu.memory_space<vmem>>, vector<16x128xbf16>,
    %c0_51 = arith.constant 0 : index
    %c2048 = arith.constant 2048 : index
    %65 = vector.load %arg2[%c0_51, %c2048] : memref<128x3072xbf16, #tpu.memory_space<vmem>>, vector<128x128xbf16>
    %cst_52 = arith.constant dense<0.000000e+00> : vector<16x128xf32>
    %66 = tpu.matmul %0, %65, %cst_52 {dimension_numbers = #tpu.dot_dimension_numbers<[1], [0], [0], [1], [0, 0, 1, 1], [], []>} : vector<16x128xbf16>, vector<128x128xbf16>, vector<16x128xf32> -> vector<16x128xf32>
    %67 = arith.truncf %66 : vector<16x128xf32> to vector<16x128xbf16>
    %c256_53 = arith.constant 256 : index
    %c0_54 = arith.constant 0 : index
    %68 = vector.load %arg4[%c256_53, %c0_54] : memref<384x128xbf16, #tpu.memory_space<vmem>>, vector<16x128xbf16>
    tpu.vector_store %arg4[%c256_53, %c0_54], %67 {strides = array<i32>} : memref<384x128xbf16, #tpu.memory_space<vmem>>, vector<16x128xbf16>,
    %c0_55 = arith.constant 0 : index
    %c2176 = arith.constant 2176 : index
    %69 = vector.load %arg2[%c0_55, %c2176] : memref<128x3072xbf16, #tpu.memory_space<vmem>>, vector<128x128xbf16>
    %cst_56 = arith.constant dense<0.000000e+00> : vector<16x128xf32>
    %70 = tpu.matmul %0, %69, %cst_56 {dimension_numbers = #tpu.dot_dimension_numbers<[1], [0], [0], [1], [0, 0, 1, 1], [], []>} : vector<16x128xbf16>, vector<128x128xbf16>, vector<16x128xf32> -> vector<16x128xf32>
    %71 = arith.truncf %70 : vector<16x128xf32> to vector<16x128xbf16>
    %c272 = arith.constant 272 : index
    %c0_57 = arith.constant 0 : index
    %72 = vector.load %arg4[%c272, %c0_57] : memref<384x128xbf16, #tpu.memory_space<vmem>>, vector<16x128xbf16>
    tpu.vector_store %arg4[%c272, %c0_57], %71 {strides = array<i32>} : memref<384x128xbf16, #tpu.memory_space<vmem>>, vector<16x128xbf16>,
    %c0_58 = arith.constant 0 : index
    %c2304 = arith.constant 2304 : index
    %73 = vector.load %arg2[%c0_58, %c2304] : memref<128x3072xbf16, #tpu.memory_space<vmem>>, vector<128x128xbf16>
    %cst_59 = arith.constant dense<0.000000e+00> : vector<16x128xf32>
    %74 = tpu.matmul %0, %73, %cst_59 {dimension_numbers = #tpu.dot_dimension_numbers<[1], [0], [0], [1], [0, 0, 1, 1], [], []>} : vector<16x128xbf16>, vector<128x128xbf16>, vector<16x128xf32> -> vector<16x128xf32>
    %75 = arith.truncf %74 : vector<16x128xf32> to vector<16x128xbf16>
    %c288 = arith.constant 288 : index
    %c0_60 = arith.constant 0 : index
    %76 = vector.load %arg4[%c288, %c0_60] : memref<384x128xbf16, #tpu.memory_space<vmem>>, vector<16x128xbf16>
    tpu.vector_store %arg4[%c288, %c0_60], %75 {strides = array<i32>} : memref<384x128xbf16, #tpu.memory_space<vmem>>, vector<16x128xbf16>,
    %c0_61 = arith.constant 0 : index
    %c2432 = arith.constant 2432 : index
    %77 = vector.load %arg2[%c0_61, %c2432] : memref<128x3072xbf16, #tpu.memory_space<vmem>>, vector<128x128xbf16>
    %cst_62 = arith.constant dense<0.000000e+00> : vector<16x128xf32>
    %78 = tpu.matmul %0, %77, %cst_62 {dimension_numbers = #tpu.dot_dimension_numbers<[1], [0], [0], [1], [0, 0, 1, 1], [], []>} : vector<16x128xbf16>, vector<128x128xbf16>, vector<16x128xf32> -> vector<16x128xf32>
    %79 = arith.truncf %78 : vector<16x128xf32> to vector<16x128xbf16>
    %c304 = arith.constant 304 : index
    %c0_63 = arith.constant 0 : index
    %80 = vector.load %arg4[%c304, %c0_63] : memref<384x128xbf16, #tpu.memory_space<vmem>>, vector<16x128xbf16>
    tpu.vector_store %arg4[%c304, %c0_63], %79 {strides = array<i32>} : memref<384x128xbf16, #tpu.memory_space<vmem>>, vector<16x128xbf16>,
    %c0_64 = arith.constant 0 : index
    %c2560 = arith.constant 2560 : index
    %81 = vector.load %arg2[%c0_64, %c2560] : memref<128x3072xbf16, #tpu.memory_space<vmem>>, vector<128x128xbf16>
    %cst_65 = arith.constant dense<0.000000e+00> : vector<16x128xf32>
    %82 = tpu.matmul %0, %81, %cst_65 {dimension_numbers = #tpu.dot_dimension_numbers<[1], [0], [0], [1], [0, 0, 1, 1], [], []>} : vector<16x128xbf16>, vector<128x128xbf16>, vector<16x128xf32> -> vector<16x128xf32>
    %83 = arith.truncf %82 : vector<16x128xf32> to vector<16x128xbf16>
    %c320 = arith.constant 320 : index
    %c0_66 = arith.constant 0 : index
    %84 = vector.load %arg4[%c320, %c0_66] : memref<384x128xbf16, #tpu.memory_space<vmem>>, vector<16x128xbf16>
    tpu.vector_store %arg4[%c320, %c0_66], %83 {strides = array<i32>} : memref<384x128xbf16, #tpu.memory_space<vmem>>, vector<16x128xbf16>,
    %c0_67 = arith.constant 0 : index
    %c2688 = arith.constant 2688 : index
    %85 = vector.load %arg2[%c0_67, %c2688] : memref<128x3072xbf16, #tpu.memory_space<vmem>>, vector<128x128xbf16>
    %cst_68 = arith.constant dense<0.000000e+00> : vector<16x128xf32>
    %86 = tpu.matmul %0, %85, %cst_68 {dimension_numbers = #tpu.dot_dimension_numbers<[1], [0], [0], [1], [0, 0, 1, 1], [], []>} : vector<16x128xbf16>, vector<128x128xbf16>, vector<16x128xf32> -> vector<16x128xf32>
    %87 = arith.truncf %86 : vector<16x128xf32> to vector<16x128xbf16>
    %c336 = arith.constant 336 : index
    %c0_69 = arith.constant 0 : index
    %88 = vector.load %arg4[%c336, %c0_69] : memref<384x128xbf16, #tpu.memory_space<vmem>>, vector<16x128xbf16>
    tpu.vector_store %arg4[%c336, %c0_69], %87 {strides = array<i32>} : memref<384x128xbf16, #tpu.memory_space<vmem>>, vector<16x128xbf16>,
    %c0_70 = arith.constant 0 : index
    %c2816 = arith.constant 2816 : index
    %89 = vector.load %arg2[%c0_70, %c2816] : memref<128x3072xbf16, #tpu.memory_space<vmem>>, vector<128x128xbf16>
    %cst_71 = arith.constant dense<0.000000e+00> : vector<16x128xf32>
    %90 = tpu.matmul %0, %89, %cst_71 {dimension_numbers = #tpu.dot_dimension_numbers<[1], [0], [0], [1], [0, 0, 1, 1], [], []>} : vector<16x128xbf16>, vector<128x128xbf16>, vector<16x128xf32> -> vector<16x128xf32>
    %91 = arith.truncf %90 : vector<16x128xf32> to vector<16x128xbf16>
    %c352 = arith.constant 352 : index
    %c0_72 = arith.constant 0 : index
    %92 = vector.load %arg4[%c352, %c0_72] : memref<384x128xbf16, #tpu.memory_space<vmem>>, vector<16x128xbf16>
    tpu.vector_store %arg4[%c352, %c0_72], %91 {strides = array<i32>} : memref<384x128xbf16, #tpu.memory_space<vmem>>, vector<16x128xbf16>,
    %c0_73 = arith.constant 0 : index
    %c2944 = arith.constant 2944 : index
    %93 = vector.load %arg2[%c0_73, %c2944] : memref<128x3072xbf16, #tpu.memory_space<vmem>>, vector<128x128xbf16>
    %cst_74 = arith.constant dense<0.000000e+00> : vector<16x128xf32>
    %94 = tpu.matmul %0, %93, %cst_74 {dimension_numbers = #tpu.dot_dimension_numbers<[1], [0], [0], [1], [0, 0, 1, 1], [], []>} : vector<16x128xbf16>, vector<128x128xbf16>, vector<16x128xf32> -> vector<16x128xf32>
    %95 = arith.truncf %94 : vector<16x128xf32> to vector<16x128xbf16>
    %c368 = arith.constant 368 : index
    %c0_75 = arith.constant 0 : index
    %96 = vector.load %arg4[%c368, %c0_75] : memref<384x128xbf16, #tpu.memory_space<vmem>>, vector<16x128xbf16>
    tpu.vector_store %arg4[%c368, %c0_75], %95 {strides = array<i32>} : memref<384x128xbf16, #tpu.memory_space<vmem>>, vector<16x128xbf16>,
    %c0_76 = arith.constant 0 : index
    %c0_77 = arith.constant 0 : index
    %97 = vector.load %arg3[%c0_76, %c0_77] : memref<128x128xbf16, #tpu.memory_space<vmem>>, vector<128x128xbf16>
    %cst_78 = arith.constant dense<0.000000e+00> : vector<16x128xf32>
    %98 = tpu.matmul %0, %97, %cst_78 {dimension_numbers = #tpu.dot_dimension_numbers<[1], [0], [0], [1], [0, 0, 1, 1], [], []>} : vector<16x128xbf16>, vector<128x128xbf16>, vector<16x128xf32> -> vector<16x128xf32>
    %c0_79 = arith.constant 0 : index
    %c0_80 = arith.constant 0 : index
    %99 = vector.load %arg5[%c0_79, %c0_80] : memref<16x128xf32, #tpu.memory_space<vmem>>, vector<16x128xf32>
    tpu.vector_store %arg5[%c0_79, %c0_80], %98 {strides = array<i32>} : memref<16x128xf32, #tpu.memory_space<vmem>>, vector<16x128xf32>,
    return
  }
  func.func @transform_0(%arg0: i32) -> (i32, i32) {
    %c0_i32 = arith.constant 0 : i32
    %c0_i32_0 = arith.constant 0 : i32
    %c0_i32_1 = arith.constant 0 : i32
    return %c0_i32, %c0_i32_0 : i32, i32
  }
  func.func @transform_1(%arg0: i32) -> (i32, i32) {
    %c0_i32 = arith.constant 0 : i32
    %c0_i32_0 = arith.constant 0 : i32
    %c0_i32_1 = arith.constant 0 : i32
    return %c0_i32, %c0_i32_0 : i32, i32
  }
  func.func @transform_2(%arg0: i32) -> (i32, i32) {
    %c0_i32 = arith.constant 0 : i32
    %c0_i32_0 = arith.constant 0 : i32
    %c0_i32_1 = arith.constant 0 : i32
    return %c0_i32, %c0_i32_0 : i32, i32
  }
  func.func @transform_3(%arg0: i32) -> (i32, i32) {
    %c0_i32 = arith.constant 0 : i32
    %c0_i32_0 = arith.constant 0 : i32
    %c0_i32_1 = arith.constant 0 : i32
    return %c0_i32, %c0_i32_0 : i32, i32
  }
  func.func @transform_4(%arg0: i32) -> (i32, i32) {
    %c0_i32 = arith.constant 0 : i32
    %c0_i32_0 = arith.constant 0 : i32
    %c0_i32_1 = arith.constant 0 : i32
    return %c0_i32, %c0_i32_0 : i32, i32
  }
}

</mosaic_0001>

<bundles_post_ra>
// kernel: tpu_custom_call.1
= control target key start
LH: loop header
LB: loop body
LE: loop exit
PB: predicated region body
PF: predicated region fallthrough
CT: control target
= control target key end

     0   :  { %10 = vsyncpa [#allocation3], 0  ;;  %s4606_s0 = inlined_call_operand.hbm [shape: bf16[16,128], index: 0, kind: input, shape index: {}]   ;;  %s4607_s1 = inlined_call_operand.hbm [shape: bf16[128,3072], index: 1, kind: input, shape index: {}]   ;;  %s4608_s2 = inlined_call_operand.hbm [shape: bf16[128,128], index: 2, kind: input, shape index: {}]   ;;  %s4609_s3 = inlined_call_operand.hbm [shape: bf16[384,128], index: 3, kind: output, shape index: {0}]   ;;  %s4610_s4 = inlined_call_operand.hbm [shape: f32[16,128], index: 4, kind: output, shape index: {1}]  }
   0x1   :  { %11 = vsyncpa [#allocation6], 0 }
   0x2   :  { %12 = vsyncpa [#allocation4], 0 }
   0x3   :  { %13 = vsyncpa [#allocation10], 0  ;;  %s4266_s15 = smov [#allocation5]  }
   0x4   :  { %s31_s16 = sshll.u32 %s4266_s15, 4  ;;  %s32_s16 = int_to_ptr.vmem [resolvable:$true] %s31_s16 }
   0x5   :  { %s4166_s17 = scalar_lea.vmem %s32_s16, 24576  ;;  %p4171_p1 = scmp.lt.s32.totalorder %s32_s16, %s32_s16 }
   0x6   :  { %p4167_p0 = scmp.ne.s32.totalorder %s32_s16, %s4166_s17  ;;  %p4172_p2 = scmp.lt.s32.totalorder %s4166_s17, %s4166_s17 }
   0x8   :  { %p4173_p3 = por %p4172_p2, %p4171_p1 }
   0xa   :  { %p4174_p4 = pnand %p4173_p3, %p4167_p0 }
   0xc   :  { %4177 = shalt.err (!%p4174_p4)
}
   0xd   :  { %s4267_s18 = smov 1536   ;;  %s4268_s19 = smov 96  }
   0xe   :  { %37 = dma.hbm_to_vmem [thread:$0]  %s4607_s1, 24576, %s32_s16, [#allocation6], %s4267_s18, %s4267_s18, %s4268_s19  }
   0xf   :  { %s4269_s22 = smov [#allocation2]  }
  0x10   :  { %s19_s23 = sshll.u32 %s4269_s22, 4  ;;  %s20_s23 = int_to_ptr.vmem [resolvable:$true] %s19_s23 }
  0x11   :  { %s4186_s24 = scalar_lea.vmem %s20_s23, 128  ;;  %p4191_p6 = scmp.lt.s32.totalorder %s20_s23, %s20_s23 }
  0x12   :  { %p4187_p5 = scmp.ne.s32.totalorder %s20_s23, %s4186_s24  ;;  %p4192_p7 = scmp.lt.s32.totalorder %s4186_s24, %s4186_s24 }
  0x14   :  { %p4193_p8 = por %p4192_p7, %p4191_p6 }
  0x16   :  { %p4194_p9 = pnand %p4193_p8, %p4187_p5 }
  0x18   :  { %4197 = shalt.err (!%p4194_p9)
}
  0x19   :  { %s4270_s25 = smov 64   ;;  %s4271_s26 = smov 4  }
  0x1a   :  { %25 = dma.hbm_to_vmem [thread:$0]  %s4606_s0, 128, %s20_s23, [#allocation3], %s4270_s25, %s4270_s25, %s4271_s26  }
  0x1b   :  { %s4272_s1 = smov [#allocation7]  }
  0x1c   :  { %s43_s29 = sshll.u32 %s4272_s1, 4  ;;  %s44_s29 = int_to_ptr.vmem [resolvable:$true] %s43_s29 }
  0x1d   :  { %s4206_s30 = scalar_lea.vmem %s44_s29, 1024  ;;  %p4211_p11 = scmp.lt.s32.totalorder %s44_s29, %s44_s29 }
  0x1e   :  { %p4207_p10 = scmp.ne.s32.totalorder %s44_s29, %s4206_s30  ;;  %p4212_p12 = scmp.lt.s32.totalorder %s4206_s30, %s4206_s30 }
  0x20   :  { %p4213_p13 = por %p4212_p12, %p4211_p11 }
  0x22   :  { %p4214_p0 = pnand %p4213_p13, %p4207_p10 }
  0x24   :  { %4217 = shalt.err (!%p4214_p0)
}
  0x25   :  { %49 = dma.hbm_to_vmem [thread:$0]  %s4608_s2, 1024, %s44_s29, [#allocation6], %s4270_s25, %s4270_s25, %s4271_s26  }
  0x26   :  { %4258 = dma.done.wait [#allocation3], 128  }
  0x27   :  { %4259 = vsyncadd [#allocation3], 4294967168 }
  0x28   :  { %4260 = dma.done.wait [#allocation6], 25600  }
  0x29   :  { %4261 = vsyncadd [#allocation6], 4294941696  ;;  %v4273_v0 = vmov 0.0   ;;  %vm4274_vm0 = vmmov 0   ;;  %v76_v1 = vld [vmem:[#allocation5 + $0x540] sm:$0xf] }
  0x2a   :  { %3634 = vmatprep.subr.bf16.mxu0 %v4273_v0  ;;  %3654 = vmatprep.subr.bf16.mxu1 %v4273_v0  ;;  %v77_v2 = vld [vmem:[#allocation5 + $0x5a0] sm:$0xf]  ;;  %v197_v9 = vld [vmem:[#allocation5 + $0x544] sm:$0xf]  ;;  %v312_v45 = vld [vmem:[#allocation5 + $0x548] sm:$0xf] }
  0x2b   :  { %3650 = vmatprep.mubr.msk.bf16.mxu0 %vm4274_vm0, %v4273_v0  ;;  %3670 = vmatprep.mubr.msk.bf16.mxu1 %vm4274_vm0, %v4273_v0  ;;  %v74_v3 = vld [vmem:[#allocation5 + $0x480] sm:$0xf]  ;;  %v2977_v4 = vcombine.low %v76_v1, %v77_v2  ;;  %v198_v10 = vld [vmem:[#allocation5 + $0x5a4] sm:$0xf]  ;;  %v313_v46 = vld [vmem:[#allocation5 + $0x5a8] sm:$0xf] }
  0x2c   :  { %v75_v5 = vld [vmem:[#allocation5 + $0x4e0] sm:$0xf]  ;;  %v2987_v11 = vcombine.low %v197_v9, %v198_v10  ;;  %v195_v12 = vld [vmem:[#allocation5 + $0x484] sm:$0xf]  ;;  %v4338_v50 = vld [vmem:[#allocation2] sm:$0xff]   ;;  %v2997_v51 = vcombine.low %v312_v45, %v313_v46  ;;  %s4275_s0 = smov [#allocation8]  }
  0x2d   :  { %3635 = vmatpush3.bf16.msra.mxu0 %v2977_v4  ;;  %v2976_v6 = vcombine.low %v74_v3, %v75_v5  ;;  %v72_v7 = vld [vmem:[#allocation5 + $0x3c0] sm:$0xf]  ;;  %v196_v13 = vld [vmem:[#allocation5 + $0x4e4] sm:$0xf]  ;;  %v310_v52 = vld [vmem:[#allocation5 + $0x488] sm:$0xf] }
  0x2e   :  { %3636 = vmatprep.subr.bf16.mxu0 %v4273_v0  ;;  %v73_v8 = vld [vmem:[#allocation5 + $0x420] sm:$0xf]  ;;  %3655 = vmatpush3.bf16.msra.mxu1 %v2987_v11  ;;  %v2986_v17 = vcombine.low %v195_v12, %v196_v13  ;;  %v193_v18 = vld [vmem:[#allocation5 + $0x3c4] sm:$0xf]  ;;  %v311_v53 = vld [vmem:[#allocation5 + $0x4e8] sm:$0xf] }
  0x2f   :  { %v2975_v14 = vcombine.low %v72_v7, %v73_v8  ;;  %v70_v15 = vld [vmem:[#allocation5 + $0x300] sm:$0xf]  ;;  %3656 = vmatprep.subr.bf16.mxu1 %v4273_v0  ;;  %v194_v19 = vld [vmem:[#allocation5 + $0x424] sm:$0xf]  ;;  %v427_v55 = vld [vmem:[#allocation5 + $0x54c] sm:$0xf]  ;;  %v2996_v57 = vcombine.low %v310_v52, %v311_v53 }
  0x30   :  { %v71_v16 = vld [vmem:[#allocation5 + $0x360] sm:$0xf]  ;;  %v2985_v23 = vcombine.low %v193_v18, %v194_v19  ;;  %v191_v24 = vld [vmem:[#allocation5 + $0x304] sm:$0xf]  ;;  %v428_v56 = vld [vmem:[#allocation5 + $0x5ac] sm:$0xf] }
  0x31   :  { %3637 = vmatpush3.bf16.msra.mxu0 %v2976_v6  ;;  %v2974_v20 = vcombine.low %v70_v15, %v71_v16  ;;  %v68_v21 = vld [vmem:[#allocation5 + $0x240] sm:$0xf]  ;;  %v192_v25 = vld [vmem:[#allocation5 + $0x364] sm:$0xf]  ;;  %v308_v58 = vld [vmem:[#allocation5 + $0x3c8] sm:$0xf]  ;;  %v3007_v60 = vcombine.low %v427_v55, %v428_v56 }
  0x32   :  { %3638 = vmatprep.subr.bf16.mxu0 %v4273_v0  ;;  %v69_v22 = vld [vmem:[#allocation5 + $0x2a0] sm:$0xf]  ;;  %3657 = vmatpush3.bf16.msra.mxu1 %v2986_v17  ;;  %v2984_v29 = vcombine.low %v191_v24, %v192_v25  ;;  %v189_v30 = vld [vmem:[#allocation5 + $0x244] sm:$0xf]  ;;  %v309_v59 = vld [vmem:[#allocation5 + $0x428] sm:$0xf] }
  0x33   :  { %3658 = vmatprep.subr.bf16.mxu1 %v4273_v0  ;;  %v2973_v26 = vcombine.low %v68_v21, %v69_v22  ;;  %v66_v27 = vld [vmem:[#allocation5 + $0x180] sm:$0xf]  ;;  %v190_v31 = vld [vmem:[#allocation5 + $0x2a4] sm:$0xf]  ;;  %v425_v61 = vld [vmem:[#allocation5 + $0x48c] sm:$0xf]  ;;  %v2995_v63 = vcombine.low %v308_v58, %v309_v59 }
  0x34   :  { %v67_v28 = vld [vmem:[#allocation5 + $0x1e0] sm:$0xf]  ;;  %v2983_v35 = vcombine.low %v189_v30, %v190_v31  ;;  %v187_v36 = vld [vmem:[#allocation5 + $0x184] sm:$0xf]  ;;  %v426_v62 = vld [vmem:[#allocation5 + $0x4ec] sm:$0xf] }
  0x35   :  { %3639 = vmatpush3.bf16.msra.mxu0 %v2975_v14  ;;  %v2972_v32 = vcombine.low %v66_v27, %v67_v28  ;;  %v64_v33 = vld [vmem:[#allocation5 + $0xc0] sm:$0xf]  ;;  %v188_v37 = vld [vmem:[#allocation5 + $0x1e4] sm:$0xf]  ;;  %v306_v1 = vld [vmem:[#allocation5 + $0x308] sm:$0xf]  ;;  %v3006_v3 = vcombine.low %v425_v61, %v426_v62 }
  0x36   :  { %3640 = vmatprep.subr.bf16.mxu0 %v4273_v0  ;;  %3659 = vmatpush3.bf16.msra.mxu1 %v2985_v23  ;;  %v65_v34 = vld [vmem:[#allocation5 + $0x120] sm:$0xf]  ;;  %v2982_v41 = vcombine.low %v187_v36, %v188_v37  ;;  %v185_v42 = vld [vmem:[#allocation5 + $0xc4] sm:$0xf]  ;;  %v307_v2 = vld [vmem:[#allocation5 + $0x368] sm:$0xf] }
  0x37   :  { %3660 = vmatprep.subr.bf16.mxu1 %v4273_v0  ;;  %v2971_v38 = vcombine.low %v64_v33, %v65_v34  ;;  %v62_v39 = vld [vmem:[#allocation5] sm:$0xf]  ;;  %v186_v43 = vld [vmem:[#allocation5 + $0x124] sm:$0xf]  ;;  %v423_v4 = vld [vmem:[#allocation5 + $0x3cc] sm:$0xf]  ;;  %v2994_v6 = vcombine.low %v306_v1, %v307_v2 }
  0x38   :  { %v63_v40 = vld [vmem:[#allocation5 + $0x60] sm:$0xf]  ;;  %v2981_v47 = vcombine.low %v185_v42, %v186_v43  ;;  %v183_v48 = vld [vmem:[#allocation5 + $0x4] sm:$0xf]  ;;  %v424_v5 = vld [vmem:[#allocation5 + $0x42c] sm:$0xf] }
  0x39   :  { %3641 = vmatpush3.bf16.msra.mxu0 %v2974_v20  ;;  %v2970_v44 = vcombine.low %v62_v39, %v63_v40  ;;  %v184_v49 = vld [vmem:[#allocation5 + $0x64] sm:$0xf]  ;;  %v304_v7 = vld [vmem:[#allocation5 + $0x248] sm:$0xf]  ;;  %v3005_v9 = vcombine.low %v423_v4, %v424_v5  ;;  %v421_v10 = vld [vmem:[#allocation5 + $0x30c] sm:$0xf] }
  0x3a   :  { %3642 = vmatprep.subr.bf16.mxu0 %v4273_v0  ;;  %3661 = vmatpush3.bf16.msra.mxu1 %v2984_v29  ;;  %v2980_v54 = vcombine.low %v183_v48, %v184_v49  ;;  %v305_v8 = vld [vmem:[#allocation5 + $0x2a8] sm:$0xf]  ;;  %v422_v11 = vld [vmem:[#allocation5 + $0x36c] sm:$0xf]  ;;  %v542_v31 = vld [vmem:[#allocation5 + $0x550] sm:$0xf] }
  0x3b   :  { %3662 = vmatprep.subr.bf16.mxu1 %v4273_v0  ;;  %v2993_v12 = vcombine.low %v304_v7, %v305_v8  ;;  %v302_v13 = vld [vmem:[#allocation5 + $0x188] sm:$0xf]  ;;  %v3004_v15 = vcombine.low %v421_v10, %v422_v11  ;;  %v419_v16 = vld [vmem:[#allocation5 + $0x24c] sm:$0xf]  ;;  %v540_v37 = vld [vmem:[#allocation5 + $0x490] sm:$0xf] }
  0x3c   :  { %v303_v14 = vld [vmem:[#allocation5 + $0x1e8] sm:$0xf]  ;;  %v420_v17 = vld [vmem:[#allocation5 + $0x2ac] sm:$0xf]  ;;  %v657_v40 = vld [vmem:[#allocation5 + $0x554] sm:$0xf] }
  0x3d   :  { %3643 = vmatpush3.bf16.msra.mxu0 %v2973_v26  ;;  %v2992_v18 = vcombine.low %v302_v13, %v303_v14  ;;  %v300_v19 = vld [vmem:[#allocation5 + $0xc8] sm:$0xf]  ;;  %v3003_v21 = vcombine.low %v419_v16, %v420_v17  ;;  %v417_v22 = vld [vmem:[#allocation5 + $0x18c] sm:$0xf]  ;;  %v538_v43 = vld [vmem:[#allocation5 + $0x3d0] sm:$0xf] }
  0x3e   :  { %3644 = vmatprep.subr.bf16.mxu0 %v4273_v0  ;;  %3663 = vmatpush3.bf16.msra.mxu1 %v2983_v35  ;;  %v301_v20 = vld [vmem:[#allocation5 + $0x128] sm:$0xf]  ;;  %v418_v23 = vld [vmem:[#allocation5 + $0x1ec] sm:$0xf]  ;;  %v655_v46 = vld [vmem:[#allocation5 + $0x494] sm:$0xf] }
  0x3f   :  { %3664 = vmatprep.subr.bf16.mxu1 %v4273_v0  ;;  %v2991_v24 = vcombine.low %v300_v19, %v301_v20  ;;  %v298_v25 = vld [vmem:[#allocation5 + $0x8] sm:$0xf]  ;;  %v3002_v27 = vcombine.low %v417_v22, %v418_v23  ;;  %v415_v28 = vld [vmem:[#allocation5 + $0xcc] sm:$0xf]  ;;  %v536_v49 = vld [vmem:[#allocation5 + $0x310] sm:$0xf] }
  0x40   :  { %v299_v26 = vld [vmem:[#allocation5 + $0x68] sm:$0xf]  ;;  %v416_v29 = vld [vmem:[#allocation5 + $0x12c] sm:$0xf]  ;;  %v653_v53 = vld [vmem:[#allocation5 + $0x3d4] sm:$0xf] }
  0x41   :  { %3645 = vmatpush3.bf16.msra.mxu0 %v2972_v32  ;;  %v2990_v30 = vcombine.low %v298_v25, %v299_v26  ;;  %v543_v32 = vld [vmem:[#allocation5 + $0x5b0] sm:$0xf]  ;;  %v3001_v33 = vcombine.low %v415_v28, %v416_v29  ;;  %v413_v34 = vld [vmem:[#allocation5 + $0xc] sm:$0xf]  ;;  %v651_v59 = vld [vmem:[#allocation5 + $0x314] sm:$0xf] }
  0x42   :  { %3646 = vmatprep.subr.bf16.mxu0 %v4273_v0  ;;  %3665 = vmatpush3.bf16.msra.mxu1 %v2982_v41  ;;  %v414_v35 = vld [vmem:[#allocation5 + $0x6c] sm:$0xf]  ;;  %v3017_v36 = vcombine.low %v542_v31, %v543_v32  ;;  %v658_v41 = vld [vmem:[#allocation5 + $0x5b4] sm:$0xf]  ;;  %v534_v56 = vld [vmem:[#allocation5 + $0x250] sm:$0xf] }
  0x43   :  { %3666 = vmatprep.subr.bf16.mxu1 %v4273_v0  ;;  %v3000_v39 = vcombine.low %v413_v34, %v414_v35  ;;  %v3027_v45 = vcombine.low %v657_v40, %v658_v41  ;;  %v532_v62 = vld [vmem:[#allocation5 + $0x190] sm:$0xf]  ;;  %v649_v2 = vld [vmem:[#allocation5 + $0x254] sm:$0xf]  ;;  %v772_v17 = vld [vmem:[#allocation5 + $0x558] sm:$0xf] }
  0x44   :  { %v530_v5 = vld [vmem:[#allocation5 + $0xd0] sm:$0xf]  ;;  %v647_v8 = vld [vmem:[#allocation5 + $0x194] sm:$0xf]  ;;  %v770_v23 = vld [vmem:[#allocation5 + $0x498] sm:$0xf] }
  0x45   :  { %3647 = vmatpush3.bf16.msra.mxu0 %v2971_v38  ;;  %v541_v38 = vld [vmem:[#allocation5 + $0x4f0] sm:$0xf]  ;;  %v645_v14 = vld [vmem:[#allocation5 + $0xd4] sm:$0xf]  ;;  %v887_v26 = vld [vmem:[#allocation5 + $0x55c] sm:$0xf] }
  0x46   :  { %3648 = vmatprep.subr.bf16.mxu0 %v4273_v0  ;;  %3667 = vmatpush3.bf16.msra.mxu1 %v2981_v47  ;;  %v3016_v42 = vcombine.low %v540_v37, %v541_v38  ;;  %v656_v47 = vld [vmem:[#allocation5 + $0x4f4] sm:$0xf]  ;;  %v528_v11 = vld [vmem:[#allocation5 + $0x10] sm:$0xf]  ;;  %v768_v29 = vld [vmem:[#allocation5 + $0x3d8] sm:$0xf] }
  0x47   :  { %3668 = vmatprep.subr.bf16.mxu1 %v4273_v0  ;;  %v3026_v52 = vcombine.low %v655_v46, %v656_v47  ;;  %v643_v20 = vld [vmem:[#allocation5 + $0x14] sm:$0xf]  ;;  %v885_v32 = vld [vmem:[#allocation5 + $0x49c] sm:$0xf]  ;;  %v766_v35 = vld [vmem:[#allocation5 + $0x318] sm:$0xf] }
  0x48   :  { %v883_v38 = vld [vmem:[#allocation5 + $0x3dc] sm:$0xf]  ;;  %v764_v41 = vld [vmem:[#allocation5 + $0x258] sm:$0xf]  ;;  %s2940_s2 = sshll.u32 %s4275_s0, 4  ;;  %s2941_s2 = int_to_ptr.vmem [resolvable:$true] %s2940_s2 }
  0x49   :  { %3649 = vmatpush3.bf16.msra.mxu0 %v2970_v44  ;;  %v539_v44 = vld [vmem:[#allocation5 + $0x430] sm:$0xf]  ;;  %v762_v47 = vld [vmem:[#allocation5 + $0x198] sm:$0xf]  ;;  %s4218_s7 = scalar_lea.vmem %s2941_s2, 3072  ;;  %p4223_p2 = scmp.lt.s32.totalorder %s2941_s2, %s2941_s2 }
  0x4a   :  { %3674 = vmatprep.subr.bf16.mxu0 %v4273_v0  ;;  %3669 = vmatpush3.bf16.msra.mxu1 %v2980_v54  ;;  %v3015_v48 = vcombine.low %v538_v43, %v539_v44  ;;  %v654_v54 = vld [vmem:[#allocation5 + $0x434] sm:$0xf]  ;;  %v881_v44 = vld [vmem:[#allocation5 + $0x31c] sm:$0xf]  ;;  %p4219_p1 = scmp.ne.s32.totalorder %s2941_s2, %s4218_s7  ;;  %p4224_p3 = scmp.lt.s32.totalorder %s4218_s7, %s4218_s7 }
  0x4b   :  { %3694 = vmatprep.subr.bf16.mxu1 %v4273_v0  ;;  %v3025_v58 = vcombine.low %v653_v53, %v654_v54  ;;  %v760_v54 = vld [vmem:[#allocation5 + $0xd8] sm:$0xf] }
  0x4c   :  { %3651 = vmatmul.mubr.bf16.vlgmr.msra.gmra.mxu0 %v4338_v50  ;;  %p4225_p4 = por %p4224_p3, %p4223_p2 }
  0x4d   :  { %3675 = vmatpush3.bf16.msra.mxu0 %v2997_v51  ;;  %3690 = vmatprep.mubr.msk.bf16.mxu0 %vm4274_vm0, %v4273_v0  ;;  %v537_v51 = vld [vmem:[#allocation5 + $0x370] sm:$0xf] }
  0x4e   :  { %3676 = vmatprep.subr.bf16.mxu0 %v4273_v0  ;;  %3671 = vmatmul.mubr.bf16.vlgmr.msra.gmra.mxu1 %v4338_v50  ;;  %v3014_v55 = vcombine.low %v536_v49, %v537_v51  ;;  %v879_v51 = vld [vmem:[#allocation5 + $0x25c] sm:$0xf]  ;;  %p4226_p5 = pnand %p4225_p4, %p4219_p1 }
  0x4f   :  { %3695 = vmatpush3.bf16.msra.mxu1 %v3007_v60  ;;  %3710 = vmatprep.mubr.msk.bf16.mxu1 %vm4274_vm0, %v4273_v0  ;;  %v652_v60 = vld [vmem:[#allocation5 + $0x374] sm:$0xf] }
  0x50   :  { %3696 = vmatprep.subr.bf16.mxu1 %v4273_v0  ;;  %v3024_v1 = vcombine.low %v651_v59, %v652_v60  ;;  %v758_v60 = vld [vmem:[#allocation5 + $0x18] sm:$0xf] }
  0x51   :  { %3677 = vmatpush3.bf16.msra.mxu0 %v2996_v57  ;;  %v535_v57 = vld [vmem:[#allocation5 + $0x2b0] sm:$0xf] }
  0x52   :  { %3678 = vmatprep.subr.bf16.mxu0 %v4273_v0  ;;  %v3013_v61 = vcombine.low %v534_v56, %v535_v57  ;;  %v877_v57 = vld [vmem:[#allocation5 + $0x19c] sm:$0xf] }
  0x53   :  { %3697 = vmatpush3.bf16.msra.mxu1 %v3006_v3  ;;  %v650_v3 = vld [vmem:[#allocation5 + $0x2b4] sm:$0xf] }
  0x54   :  { %3698 = vmatprep.subr.bf16.mxu1 %v4273_v0  ;;  %v3023_v7 = vcombine.low %v649_v2, %v650_v3  ;;  %v1002_v3 = vld [vmem:[#allocation5 + $0x560] sm:$0xf] }
  0x55   :  { %3679 = vmatpush3.bf16.msra.mxu0 %v2995_v63  ;;  %v533_v63 = vld [vmem:[#allocation5 + $0x1f0] sm:$0xf] }
  0x56   :  { %3680 = vmatprep.subr.bf16.mxu0 %v4273_v0  ;;  %v3012_v4 = vcombine.low %v532_v62, %v533_v63  ;;  %v875_v63 = vld [vmem:[#allocation5 + $0xdc] sm:$0xf] }
  0x57   :  { %3699 = vmatpush3.bf16.msra.mxu1 %v3005_v9  ;;  %v648_v9 = vld [vmem:[#allocation5 + $0x1f4] sm:$0xf] }
  0x58   :  { %3700 = vmatprep.subr.bf16.mxu1 %v4273_v0  ;;  %v3022_v13 = vcombine.low %v647_v8, %v648_v9  ;;  %v1000_v9 = vld [vmem:[#allocation5 + $0x4a0] sm:$0xf] }
  0x59   :  { %3681 = vmatpush3.bf16.msra.mxu0 %v2994_v6  ;;  %v531_v6 = vld [vmem:[#allocation5 + $0x130] sm:$0xf] }
  0x5a   :  { %3682 = vmatprep.subr.bf16.mxu0 %v4273_v0  ;;  %v3011_v10 = vcombine.low %v530_v5, %v531_v6  ;;  %v873_v6 = vld [vmem:[#allocation5 + $0x1c] sm:$0xf] }
  0x5b   :  { %3701 = vmatpush3.bf16.msra.mxu1 %v3004_v15  ;;  %v646_v15 = vld [vmem:[#allocation5 + $0x134] sm:$0xf] }
  0x5c   :  { %3702 = vmatprep.subr.bf16.mxu1 %v4273_v0  ;;  %v3021_v19 = vcombine.low %v645_v14, %v646_v15  ;;  %v998_v15 = vld [vmem:[#allocation5 + $0x3e0] sm:$0xf] }
  0x5d   :  { %3683 = vmatpush3.bf16.msra.mxu0 %v2993_v12  ;;  %v529_v12 = vld [vmem:[#allocation5 + $0x70] sm:$0xf] }
  0x5e   :  { %3684 = vmatprep.subr.bf16.mxu0 %v4273_v0  ;;  %v3010_v16 = vcombine.low %v528_v11, %v529_v12  ;;  %v1117_v12 = vld [vmem:[#allocation5 + $0x564] sm:$0xf] }
  0x5f   :  { %3703 = vmatpush3.bf16.msra.mxu1 %v3003_v21  ;;  %v644_v21 = vld [vmem:[#allocation5 + $0x74] sm:$0xf] }
  0x60   :  { %3704 = vmatprep.subr.bf16.mxu1 %v4273_v0  ;;  %v3020_v25 = vcombine.low %v643_v20, %v644_v21  ;;  %v996_v21 = vld [vmem:[#allocation5 + $0x320] sm:$0xf] }
  0x61   :  { %3685 = vmatpush3.bf16.msra.mxu0 %v2992_v18  ;;  %v773_v18 = vld [vmem:[#allocation5 + $0x5b8] sm:$0xf] }
  0x62   :  { %3686 = vmatprep.subr.bf16.mxu0 %v4273_v0  ;;  %v3037_v22 = vcombine.low %v772_v17, %v773_v18  ;;  %v1115_v18 = vld [vmem:[#allocation5 + $0x4a4] sm:$0xf] }
  0x63   :  { %3705 = vmatpush3.bf16.msra.mxu1 %v3002_v27  ;;  %v888_v27 = vld [vmem:[#allocation5 + $0x5bc] sm:$0xf] }
  0x64   :  { %3706 = vmatprep.subr.bf16.mxu1 %v4273_v0  ;;  %v3047_v31 = vcombine.low %v887_v26, %v888_v27  ;;  %v994_v27 = vld [vmem:[#allocation5 + $0x260] sm:$0xf] }
  0x65   :  { %3687 = vmatpush3.bf16.msra.mxu0 %v2991_v24  ;;  %v771_v24 = vld [vmem:[#allocation5 + $0x4f8] sm:$0xf] }
  0x66   :  { %3688 = vmatprep.subr.bf16.mxu0 %v4273_v0  ;;  %v3036_v28 = vcombine.low %v770_v23, %v771_v24  ;;  %v1113_v24 = vld [vmem:[#allocation5 + $0x3e4] sm:$0xf] }
  0x67   :  { %3707 = vmatpush3.bf16.msra.mxu1 %v3001_v33  ;;  %v886_v33 = vld [vmem:[#allocation5 + $0x4fc] sm:$0xf] }
  0x68   :  { %3708 = vmatprep.subr.bf16.mxu1 %v4273_v0  ;;  %v3046_v37 = vcombine.low %v885_v32, %v886_v33  ;;  %v992_v33 = vld [vmem:[#allocation5 + $0x1a0] sm:$0xf] }
  0x69   :  { %3689 = vmatpush3.bf16.msra.mxu0 %v2990_v30  ;;  %v769_v30 = vld [vmem:[#allocation5 + $0x438] sm:$0xf] }
  0x6a   :  { %3714 = vmatprep.subr.bf16.mxu0 %v4273_v0  ;;  %v3035_v34 = vcombine.low %v768_v29, %v769_v30  ;;  %v1111_v30 = vld [vmem:[#allocation5 + $0x324] sm:$0xf] }
  0x6b   :  { %3709 = vmatpush3.bf16.msra.mxu1 %v3000_v39  ;;  %v884_v39 = vld [vmem:[#allocation5 + $0x43c] sm:$0xf] }
  0x6c   :  { %3691 = vmatmul.mubr.bf16.vlgmr.msra.gmra.mxu0 %v4338_v50  ;;  %3734 = vmatprep.subr.bf16.mxu1 %v4273_v0  ;;  %v3045_v43 = vcombine.low %v883_v38, %v884_v39  ;;  %v990_v39 = vld [vmem:[#allocation5 + $0xe0] sm:$0xf] }
  0x6d   :  { %3715 = vmatpush3.bf16.msra.mxu0 %v3017_v36  ;;  %3730 = vmatprep.mubr.msk.bf16.mxu0 %vm4274_vm0, %v4273_v0  ;;  %v767_v36 = vld [vmem:[#allocation5 + $0x378] sm:$0xf] }
  0x6e   :  { %3716 = vmatprep.subr.bf16.mxu0 %v4273_v0  ;;  %3711 = vmatmul.mubr.bf16.vlgmr.msra.gmra.mxu1 %v4338_v50  ;;  %v3034_v40 = vcombine.low %v766_v35, %v767_v36  ;;  %v1109_v36 = vld [vmem:[#allocation5 + $0x264] sm:$0xf] }
  0x6f   :  { %3735 = vmatpush3.bf16.msra.mxu1 %v3027_v45  ;;  %3750 = vmatprep.mubr.msk.bf16.mxu1 %vm4274_vm0, %v4273_v0  ;;  %v882_v45 = vld [vmem:[#allocation5 + $0x37c] sm:$0xf] }
  0x70   :  { %3736 = vmatprep.subr.bf16.mxu1 %v4273_v0  ;;  %v3044_v49 = vcombine.low %v881_v44, %v882_v45  ;;  %v988_v45 = vld [vmem:[#allocation5 + $0x20] sm:$0xf] }
  0x71   :  { %3717 = vmatpush3.bf16.msra.mxu0 %v3016_v42  ;;  %v765_v42 = vld [vmem:[#allocation5 + $0x2b8] sm:$0xf] }
  0x72   :  { %3718 = vmatprep.subr.bf16.mxu0 %v4273_v0  ;;  %v3033_v46 = vcombine.low %v764_v41, %v765_v42  ;;  %v1107_v42 = vld [vmem:[#allocation5 + $0x1a4] sm:$0xf] }
  0x73   :  { %3737 = vmatpush3.bf16.msra.mxu1 %v3026_v52  ;;  %v880_v52 = vld [vmem:[#allocation5 + $0x2bc] sm:$0xf] }
  0x74   :  { %3738 = vmatprep.subr.bf16.mxu1 %v4273_v0  ;;  %v3043_v56 = vcombine.low %v879_v51, %v880_v52  ;;  %v1232_v52 = vld [vmem:[#allocation5 + $0x568] sm:$0xf] }
  0x75   :  { %3719 = vmatpush3.bf16.msra.mxu0 %v3015_v48  ;;  %v763_v48 = vld [vmem:[#allocation5 + $0x1f8] sm:$0xf] }
  0x76   :  { %3720 = vmatprep.subr.bf16.mxu0 %v4273_v0  ;;  %v3032_v53 = vcombine.low %v762_v47, %v763_v48  ;;  %v1105_v48 = vld [vmem:[#allocation5 + $0xe4] sm:$0xf] }
  0x77   :  { %3739 = vmatpush3.bf16.msra.mxu1 %v3025_v58  ;;  %v878_v58 = vld [vmem:[#allocation5 + $0x1fc] sm:$0xf] }
  0x78   :  { %3740 = vmatprep.subr.bf16.mxu1 %v4273_v0  ;;  %v3042_v62 = vcombine.low %v877_v57, %v878_v58  ;;  %v1230_v58 = vld [vmem:[#allocation5 + $0x4a8] sm:$0xf] }
  0x79   :  { %3721 = vmatpush3.bf16.msra.mxu0 %v3014_v55  ;;  %v761_v55 = vld [vmem:[#allocation5 + $0x138] sm:$0xf] }
  0x7a   :  { %3722 = vmatprep.subr.bf16.mxu0 %v4273_v0  ;;  %v3031_v59 = vcombine.low %v760_v54, %v761_v55  ;;  %v1103_v55 = vld [vmem:[#allocation5 + $0x24] sm:$0xf] }
  0x7b   :  { %3741 = vmatpush3.bf16.msra.mxu1 %v3024_v1  ;;  %v876_v1 = vld [vmem:[#allocation5 + $0x13c] sm:$0xf] }
  0x7c   :  { %3742 = vmatprep.subr.bf16.mxu1 %v4273_v0  ;;  %v3041_v5 = vcombine.low %v875_v63, %v876_v1  ;;  %v1228_v1 = vld [vmem:[#allocation5 + $0x3e8] sm:$0xf] }
  0x7d   :  { %3723 = vmatpush3.bf16.msra.mxu0 %v3013_v61  ;;  %v759_v61 = vld [vmem:[#allocation5 + $0x78] sm:$0xf] }
  0x7e   :  { %3724 = vmatprep.subr.bf16.mxu0 %v4273_v0  ;;  %v3030_v2 = vcombine.low %v758_v60, %v759_v61  ;;  %v1347_v61 = vld [vmem:[#allocation5 + $0x56c] sm:$0xf] }
  0x7f   :  { %3743 = vmatpush3.bf16.msra.mxu1 %v3023_v7  ;;  %v874_v7 = vld [vmem:[#allocation5 + $0x7c] sm:$0xf] }
  0x80   :  { %3744 = vmatprep.subr.bf16.mxu1 %v4273_v0  ;;  %v3040_v11 = vcombine.low %v873_v6, %v874_v7  ;;  %v1226_v7 = vld [vmem:[#allocation5 + $0x328] sm:$0xf] }
  0x81   :  { %3725 = vmatpush3.bf16.msra.mxu0 %v3012_v4  ;;  %v1003_v4 = vld [vmem:[#allocation5 + $0x5c0] sm:$0xf] }
  0x82   :  { %3726 = vmatprep.subr.bf16.mxu0 %v4273_v0  ;;  %v3057_v8 = vcombine.low %v1002_v3, %v1003_v4  ;;  %v1345_v4 = vld [vmem:[#allocation5 + $0x4ac] sm:$0xf] }
  0x83   :  { %3745 = vmatpush3.bf16.msra.mxu1 %v3022_v13  ;;  %v1118_v13 = vld [vmem:[#allocation5 + $0x5c4] sm:$0xf] }
  0x84   :  { %3746 = vmatprep.subr.bf16.mxu1 %v4273_v0  ;;  %v3067_v17 = vcombine.low %v1117_v12, %v1118_v13  ;;  %v1224_v13 = vld [vmem:[#allocation5 + $0x268] sm:$0xf] }
  0x85   :  { %3727 = vmatpush3.bf16.msra.mxu0 %v3011_v10  ;;  %v1001_v10 = vld [vmem:[#allocation5 + $0x500] sm:$0xf] }
  0x86   :  { %3728 = vmatprep.subr.bf16.mxu0 %v4273_v0  ;;  %v3056_v14 = vcombine.low %v1000_v9, %v1001_v10  ;;  %v1343_v10 = vld [vmem:[#allocation5 + $0x3ec] sm:$0xf] }
  0x87   :  { %3747 = vmatpush3.bf16.msra.mxu1 %v3021_v19  ;;  %v1116_v19 = vld [vmem:[#allocation5 + $0x504] sm:$0xf] }
  0x88   :  { %3748 = vmatprep.subr.bf16.mxu1 %v4273_v0  ;;  %v3066_v23 = vcombine.low %v1115_v18, %v1116_v19  ;;  %v1222_v19 = vld [vmem:[#allocation5 + $0x1a8] sm:$0xf] }
  0x89   :  { %3729 = vmatpush3.bf16.msra.mxu0 %v3010_v16  ;;  %v999_v16 = vld [vmem:[#allocation5 + $0x440] sm:$0xf] }
  0x8a   :  { %3754 = vmatprep.subr.bf16.mxu0 %v4273_v0  ;;  %v3055_v20 = vcombine.low %v998_v15, %v999_v16  ;;  %v1341_v16 = vld [vmem:[#allocation5 + $0x32c] sm:$0xf] }
  0x8b   :  { %3749 = vmatpush3.bf16.msra.mxu1 %v3020_v25  ;;  %v1114_v25 = vld [vmem:[#allocation5 + $0x444] sm:$0xf] }
  0x8c   :  { %3731 = vmatmul.mubr.bf16.vlgmr.msra.gmra.mxu0 %v4338_v50  ;;  %3774 = vmatprep.subr.bf16.mxu1 %v4273_v0  ;;  %v3065_v29 = vcombine.low %v1113_v24, %v1114_v25  ;;  %v1220_v25 = vld [vmem:[#allocation5 + $0xe8] sm:$0xf] }
  0x8d   :  { %3755 = vmatpush3.bf16.msra.mxu0 %v3037_v22  ;;  %3770 = vmatprep.mubr.msk.bf16.mxu0 %vm4274_vm0, %v4273_v0  ;;  %v997_v22 = vld [vmem:[#allocation5 + $0x380] sm:$0xf] }
  0x8e   :  { %3756 = vmatprep.subr.bf16.mxu0 %v4273_v0  ;;  %3751 = vmatmul.mubr.bf16.vlgmr.msra.gmra.mxu1 %v4338_v50  ;;  %v3054_v26 = vcombine.low %v996_v21, %v997_v22  ;;  %v1339_v22 = vld [vmem:[#allocation5 + $0x26c] sm:$0xf] }
  0x8f   :  { %3775 = vmatpush3.bf16.msra.mxu1 %v3047_v31  ;;  %3790 = vmatprep.mubr.msk.bf16.mxu1 %vm4274_vm0, %v4273_v0  ;;  %v1112_v31 = vld [vmem:[#allocation5 + $0x384] sm:$0xf] }
  0x90   :  { %3776 = vmatprep.subr.bf16.mxu1 %v4273_v0  ;;  %v3064_v35 = vcombine.low %v1111_v30, %v1112_v31  ;;  %v1218_v31 = vld [vmem:[#allocation5 + $0x28] sm:$0xf] }
  0x91   :  { %3757 = vmatpush3.bf16.msra.mxu0 %v3036_v28  ;;  %v995_v28 = vld [vmem:[#allocation5 + $0x2c0] sm:$0xf] }
  0x92   :  { %3758 = vmatprep.subr.bf16.mxu0 %v4273_v0  ;;  %v3053_v32 = vcombine.low %v994_v27, %v995_v28  ;;  %v1337_v28 = vld [vmem:[#allocation5 + $0x1ac] sm:$0xf] }
  0x93   :  { %3777 = vmatpush3.bf16.msra.mxu1 %v3046_v37  ;;  %v1110_v37 = vld [vmem:[#allocation5 + $0x2c4] sm:$0xf] }
  0x94   :  { %3778 = vmatprep.subr.bf16.mxu1 %v4273_v0  ;;  %v3063_v41 = vcombine.low %v1109_v36, %v1110_v37  ;;  %v1462_v37 = vld [vmem:[#allocation5 + $0x570] sm:$0xf] }
  0x95   :  { %3759 = vmatpush3.bf16.msra.mxu0 %v3035_v34  ;;  %v993_v34 = vld [vmem:[#allocation5 + $0x200] sm:$0xf] }
  0x96   :  { %3760 = vmatprep.subr.bf16.mxu0 %v4273_v0  ;;  %v3052_v38 = vcombine.low %v992_v33, %v993_v34  ;;  %v1335_v34 = vld [vmem:[#allocation5 + $0xec] sm:$0xf] }
  0x97   :  { %3779 = vmatpush3.bf16.msra.mxu1 %v3045_v43  ;;  %v1108_v43 = vld [vmem:[#allocation5 + $0x204] sm:$0xf] }
  0x98   :  { %3780 = vmatprep.subr.bf16.mxu1 %v4273_v0  ;;  %v3062_v47 = vcombine.low %v1107_v42, %v1108_v43  ;;  %v1460_v43 = vld [vmem:[#allocation5 + $0x4b0] sm:$0xf] }
  0x99   :  { %3761 = vmatpush3.bf16.msra.mxu0 %v3034_v40  ;;  %v991_v40 = vld [vmem:[#allocation5 + $0x140] sm:$0xf] }
  0x9a   :  { %3762 = vmatprep.subr.bf16.mxu0 %v4273_v0  ;;  %v3051_v44 = vcombine.low %v990_v39, %v991_v40  ;;  %v1333_v40 = vld [vmem:[#allocation5 + $0x2c] sm:$0xf] }
  0x9b   :  { %3781 = vmatpush3.bf16.msra.mxu1 %v3044_v49  ;;  %v1106_v49 = vld [vmem:[#allocation5 + $0x144] sm:$0xf] }
  0x9c   :  { %3782 = vmatprep.subr.bf16.mxu1 %v4273_v0  ;;  %v3061_v54 = vcombine.low %v1105_v48, %v1106_v49  ;;  %v1458_v49 = vld [vmem:[#allocation5 + $0x3f0] sm:$0xf] }
  0x9d   :  { %3763 = vmatpush3.bf16.msra.mxu0 %v3033_v46  ;;  %v989_v46 = vld [vmem:[#allocation5 + $0x80] sm:$0xf] }
  0x9e   :  { %3764 = vmatprep.subr.bf16.mxu0 %v4273_v0  ;;  %v3050_v51 = vcombine.low %v988_v45, %v989_v46  ;;  %v1577_v46 = vld [vmem:[#allocation5 + $0x574] sm:$0xf] }
  0x9f   :  { %3783 = vmatpush3.bf16.msra.mxu1 %v3043_v56  ;;  %v1104_v56 = vld [vmem:[#allocation5 + $0x84] sm:$0xf] }
  0xa0   :  { %3784 = vmatprep.subr.bf16.mxu1 %v4273_v0  ;;  %v3060_v60 = vcombine.low %v1103_v55, %v1104_v56  ;;  %v1456_v56 = vld [vmem:[#allocation5 + $0x330] sm:$0xf] }
  0xa1   :  { %3765 = vmatpush3.bf16.msra.mxu0 %v3032_v53  ;;  %v1233_v53 = vld [vmem:[#allocation5 + $0x5c8] sm:$0xf] }
  0xa2   :  { %3766 = vmatprep.subr.bf16.mxu0 %v4273_v0  ;;  %v3077_v57 = vcombine.low %v1232_v52, %v1233_v53  ;;  %v1575_v53 = vld [vmem:[#allocation5 + $0x4b4] sm:$0xf] }
  0xa3   :  { %3785 = vmatpush3.bf16.msra.mxu1 %v3042_v62  ;;  %v1348_v62 = vld [vmem:[#allocation5 + $0x5cc] sm:$0xf] }
  0xa4   :  { %3786 = vmatprep.subr.bf16.mxu1 %v4273_v0  ;;  %v3087_v3 = vcombine.low %v1347_v61, %v1348_v62  ;;  %v1454_v62 = vld [vmem:[#allocation5 + $0x270] sm:$0xf] }
  0xa5   :  { %3767 = vmatpush3.bf16.msra.mxu0 %v3031_v59  ;;  %v1231_v59 = vld [vmem:[#allocation5 + $0x508] sm:$0xf] }
  0xa6   :  { %3768 = vmatprep.subr.bf16.mxu0 %v4273_v0  ;;  %v3076_v63 = vcombine.low %v1230_v58, %v1231_v59  ;;  %v1573_v59 = vld [vmem:[#allocation5 + $0x3f4] sm:$0xf] }
  0xa7   :  { %3787 = vmatpush3.bf16.msra.mxu1 %v3041_v5  ;;  %v1346_v5 = vld [vmem:[#allocation5 + $0x50c] sm:$0xf] }
  0xa8   :  { %3788 = vmatprep.subr.bf16.mxu1 %v4273_v0  ;;  %v3086_v9 = vcombine.low %v1345_v4, %v1346_v5  ;;  %v1452_v4 = vld [vmem:[#allocation5 + $0x1b0] sm:$0xf] }
  0xa9   :  { %3769 = vmatpush3.bf16.msra.mxu0 %v3030_v2  ;;  %v1229_v2 = vld [vmem:[#allocation5 + $0x448] sm:$0xf]  ;;  %v1453_v5 = vld [vmem:[#allocation5 + $0x210] sm:$0xf] }
  0xaa   :  { %3794 = vmatprep.subr.bf16.mxu0 %v4273_v0  ;;  %v3075_v6 = vcombine.low %v1228_v1, %v1229_v2  ;;  %v1571_v1 = vld [vmem:[#allocation5 + $0x334] sm:$0xf] }
  0xab   :  { %3789 = vmatpush3.bf16.msra.mxu1 %v3040_v11  ;;  %v1344_v11 = vld [vmem:[#allocation5 + $0x44c] sm:$0xf]  ;;  %v1572_v2 = vld [vmem:[#allocation5 + $0x394] sm:$0xf] }
  0xac   :  { %3771 = vmatmul.mubr.bf16.vlgmr.msra.gmra.mxu0 %v4338_v50  ;;  %3814 = vmatprep.subr.bf16.mxu1 %v4273_v0  ;;  %v3085_v15 = vcombine.low %v1343_v10, %v1344_v11  ;;  %v1450_v10 = vld [vmem:[#allocation5 + $0xf0] sm:$0xf] }
  0xad   :  { %3795 = vmatpush3.bf16.msra.mxu0 %v3057_v8  ;;  %3810 = vmatprep.mubr.msk.bf16.mxu0 %vm4274_vm0, %v4273_v0  ;;  %v1227_v8 = vld [vmem:[#allocation5 + $0x388] sm:$0xf]  ;;  %v1451_v11 = vld [vmem:[#allocation5 + $0x150] sm:$0xf] }
  0xae   :  { %3796 = vmatprep.subr.bf16.mxu0 %v4273_v0  ;;  %3791 = vmatmul.mubr.bf16.vlgmr.msra.gmra.mxu1 %v4338_v50  ;;  %v3074_v12 = vcombine.low %v1226_v7, %v1227_v8  ;;  %v1569_v7 = vld [vmem:[#allocation5 + $0x274] sm:$0xf] }
  0xaf   :  { %3815 = vmatpush3.bf16.msra.mxu1 %v3067_v17  ;;  %3830 = vmatprep.mubr.msk.bf16.mxu1 %vm4274_vm0, %v4273_v0  ;;  %v1342_v17 = vld [vmem:[#allocation5 + $0x38c] sm:$0xf]  ;;  %v1570_v8 = vld [vmem:[#allocation5 + $0x2d4] sm:$0xf] }
  0xb0   :  { %3816 = vmatprep.subr.bf16.mxu1 %v4273_v0  ;;  %v3084_v21 = vcombine.low %v1341_v16, %v1342_v17  ;;  %v1448_v16 = vld [vmem:[#allocation5 + $0x30] sm:$0xf] }
  0xb1   :  { %3797 = vmatpush3.bf16.msra.mxu0 %v3056_v14  ;;  %v1225_v14 = vld [vmem:[#allocation5 + $0x2c8] sm:$0xf]  ;;  %v1449_v17 = vld [vmem:[#allocation5 + $0x90] sm:$0xf] }
  0xb2   :  { %3798 = vmatprep.subr.bf16.mxu0 %v4273_v0  ;;  %v3073_v18 = vcombine.low %v1224_v13, %v1225_v14  ;;  %v1567_v13 = vld [vmem:[#allocation5 + $0x1b4] sm:$0xf] }
  0xb3   :  { %3817 = vmatpush3.bf16.msra.mxu1 %v3066_v23  ;;  %v1340_v23 = vld [vmem:[#allocation5 + $0x2cc] sm:$0xf]  ;;  %v1568_v14 = vld [vmem:[#allocation5 + $0x214] sm:$0xf] }
  0xb4   :  { %3818 = vmatprep.subr.bf16.mxu1 %v4273_v0  ;;  %v3083_v27 = vcombine.low %v1339_v22, %v1340_v23  ;;  %v1692_v22 = vld [vmem:[#allocation5 + $0x578] sm:$0xf] }
  0xb5   :  { %3799 = vmatpush3.bf16.msra.mxu0 %v3055_v20  ;;  %v1223_v20 = vld [vmem:[#allocation5 + $0x208] sm:$0xf]  ;;  %v1693_v23 = vld [vmem:[#allocation5 + $0x5d8] sm:$0xf] }
  0xb6   :  { %3800 = vmatprep.subr.bf16.mxu0 %v4273_v0  ;;  %v3072_v24 = vcombine.low %v1222_v19, %v1223_v20  ;;  %v1565_v19 = vld [vmem:[#allocation5 + $0xf4] sm:$0xf] }
  0xb7   :  { %3819 = vmatpush3.bf16.msra.mxu1 %v3065_v29  ;;  %v1338_v29 = vld [vmem:[#allocation5 + $0x20c] sm:$0xf]  ;;  %v1566_v20 = vld [vmem:[#allocation5 + $0x154] sm:$0xf] }
  0xb8   :  { %3820 = vmatprep.subr.bf16.mxu1 %v4273_v0  ;;  %v3082_v33 = vcombine.low %v1337_v28, %v1338_v29  ;;  %v1690_v28 = vld [vmem:[#allocation5 + $0x4b8] sm:$0xf] }
  0xb9   :  { %3801 = vmatpush3.bf16.msra.mxu0 %v3054_v26  ;;  %v1221_v26 = vld [vmem:[#allocation5 + $0x148] sm:$0xf]  ;;  %v1691_v29 = vld [vmem:[#allocation5 + $0x518] sm:$0xf] }
  0xba   :  { %3802 = vmatprep.subr.bf16.mxu0 %v4273_v0  ;;  %v3071_v30 = vcombine.low %v1220_v25, %v1221_v26  ;;  %v1563_v25 = vld [vmem:[#allocation5 + $0x34] sm:$0xf] }
  0xbb   :  { %3821 = vmatpush3.bf16.msra.mxu1 %v3064_v35  ;;  %v1336_v35 = vld [vmem:[#allocation5 + $0x14c] sm:$0xf]  ;;  %v1564_v26 = vld [vmem:[#allocation5 + $0x94] sm:$0xf] }
  0xbc   :  { %3822 = vmatprep.subr.bf16.mxu1 %v4273_v0  ;;  %v3081_v39 = vcombine.low %v1335_v34, %v1336_v35  ;;  %v4474_v34 = vld [vmem:[#allocation2] sm:$0xff]   ;;  %v3116_v35 = vcombine.low %v1690_v28, %v1691_v29  ;;  %v2038_v28 = vld [vmem:[#allocation5 + $0x5e4] sm:$0xf] }
  0xbd   :  { %3803 = vmatpush3.bf16.msra.mxu0 %v3053_v32  ;;  %v1219_v32 = vld [vmem:[#allocation5 + $0x88] sm:$0xf] }
  0xbe   :  { %3804 = vmatprep.subr.bf16.mxu0 %v4273_v0  ;;  %v3070_v36 = vcombine.low %v1218_v31, %v1219_v32  ;;  %v1807_v31 = vld [vmem:[#allocation5 + $0x57c] sm:$0xf] }
  0xbf   :  { %3823 = vmatpush3.bf16.msra.mxu1 %v3063_v41  ;;  %v1334_v41 = vld [vmem:[#allocation5 + $0x8c] sm:$0xf]  ;;  %v1808_v32 = vld [vmem:[#allocation5 + $0x5dc] sm:$0xf] }
  0xc0   :  { %3824 = vmatprep.subr.bf16.mxu1 %v4273_v0  ;;  %v3080_v45 = vcombine.low %v1333_v40, %v1334_v41  ;;  %v1805_v40 = vld [vmem:[#allocation5 + $0x4bc] sm:$0xf] }
  0xc1   :  { %3805 = vmatpush3.bf16.msra.mxu0 %v3052_v38  ;;  %v1463_v38 = vld [vmem:[#allocation5 + $0x5d0] sm:$0xf]  ;;  %v1806_v41 = vld [vmem:[#allocation5 + $0x51c] sm:$0xf] }
  0xc2   :  { %3806 = vmatprep.subr.bf16.mxu0 %v4273_v0  ;;  %v3097_v42 = vcombine.low %v1462_v37, %v1463_v38  ;;  %v1688_v37 = vld [vmem:[#allocation5 + $0x3f8] sm:$0xf] }
  0xc3   :  { %3825 = vmatpush3.bf16.msra.mxu1 %v3062_v47  ;;  %v1578_v47 = vld [vmem:[#allocation5 + $0x5d4] sm:$0xf]  ;;  %v1689_v38 = vld [vmem:[#allocation5 + $0x458] sm:$0xf] }
  0xc4   :  { %3826 = vmatprep.subr.bf16.mxu1 %v4273_v0  ;;  %v3107_v52 = vcombine.low %v1577_v46, %v1578_v47  ;;  %v1686_v47 = vld [vmem:[#allocation5 + $0x338] sm:$0xf] }
  0xc5   :  { %3807 = vmatpush3.bf16.msra.mxu0 %v3051_v44  ;;  %v1461_v44 = vld [vmem:[#allocation5 + $0x510] sm:$0xf] }
  0xc6   :  { %3808 = vmatprep.subr.bf16.mxu0 %v4273_v0  ;;  %v3096_v48 = vcombine.low %v1460_v43, %v1461_v44  ;;  %v3115_v44 = vcombine.low %v1688_v37, %v1689_v38  ;;  %v2036_v37 = vld [vmem:[#allocation5 + $0x524] sm:$0xf] }
  0xc7   :  { %3827 = vmatpush3.bf16.msra.mxu1 %v3061_v54  ;;  %v1576_v54 = vld [vmem:[#allocation5 + $0x514] sm:$0xf] }
  0xc8   :  { %3828 = vmatprep.subr.bf16.mxu1 %v4273_v0  ;;  %v3106_v58 = vcombine.low %v1575_v53, %v1576_v54  ;;  %v1804_v53 = vld [vmem:[#allocation5 + $0x45c] sm:$0xf] }
  0xc9   :  { %3809 = vmatpush3.bf16.msra.mxu0 %v3050_v51  ;;  %v1459_v51 = vld [vmem:[#allocation5 + $0x450] sm:$0xf] }
  0xca   :  { %3834 = vmatprep.subr.bf16.mxu0 %v4273_v0  ;;  %v3095_v55 = vcombine.low %v1458_v49, %v1459_v51  ;;  %v3126_v49 = vcombine.low %v1805_v40, %v1806_v41 }
  0xcb   :  { %3829 = vmatpush3.bf16.msra.mxu1 %v3060_v60  ;;  %v1574_v60 = vld [vmem:[#allocation5 + $0x454] sm:$0xf] }
  0xcc   :  { %3811 = vmatmul.mubr.bf16.vlgmr.msra.gmra.mxu0 %v4338_v50  ;;  %3854 = vmatprep.subr.bf16.mxu1 %v4273_v0 }
  0xcd   :  { %3835 = vmatpush3.bf16.msra.mxu0 %v3077_v57  ;;  %3850 = vmatprep.mubr.msk.bf16.mxu0 %vm4274_vm0, %v4273_v0  ;;  %v1457_v57 = vld [vmem:[#allocation5 + $0x390] sm:$0xf] }
  0xce   :  { %3836 = vmatprep.subr.bf16.mxu0 %v4273_v0  ;;  %3831 = vmatmul.mubr.bf16.vlgmr.msra.gmra.mxu1 %v4338_v50  ;;  %v3094_v61 = vcombine.low %v1456_v56, %v1457_v57  ;;  %v1684_v56 = vld [vmem:[#allocation5 + $0x278] sm:$0xf] }
  0xcf   :  { %3855 = vmatpush3.bf16.msra.mxu1 %v3087_v3  ;;  %3870 = vmatprep.mubr.msk.bf16.mxu1 %vm4274_vm0, %v4273_v0  ;;  %v1685_v57 = vld [vmem:[#allocation5 + $0x2d8] sm:$0xf] }
  0xd0   :  { %3856 = vmatprep.subr.bf16.mxu1 %v4273_v0 }
  0xd1   :  { %3837 = vmatpush3.bf16.msra.mxu0 %v3076_v63  ;;  %v1455_v63 = vld [vmem:[#allocation5 + $0x2d0] sm:$0xf] }
  0xd2   :  { %3838 = vmatprep.subr.bf16.mxu0 %v4273_v0  ;;  %v3093_v3 = vcombine.low %v1454_v62, %v1455_v63  ;;  %v1802_v62 = vld [vmem:[#allocation5 + $0x39c] sm:$0xf]  ;;  %v3113_v63 = vcombine.low %v1684_v56, %v1685_v57  ;;  %v2031_v57 = vld [vmem:[#allocation5 + $0x344] sm:$0xf] }
  0xd3   :  { %3857 = vmatpush3.bf16.msra.mxu1 %v3086_v9  ;;  %v3092_v9 = vcombine.low %v1452_v4, %v1453_v5  ;;  %v1800_v4 = vld [vmem:[#allocation5 + $0x2dc] sm:$0xf] }
  0xd4   :  { %3858 = vmatprep.subr.bf16.mxu1 %v4273_v0 }
  0xd5   :  { %3839 = vmatpush3.bf16.msra.mxu0 %v3075_v6  ;;  %v3104_v6 = vcombine.low %v1571_v1, %v1572_v2  ;;  %v1683_v1 = vld [vmem:[#allocation5 + $0x218] sm:$0xf] }
  0xd6   :  { %3840 = vmatprep.subr.bf16.mxu0 %v4273_v0 }
  0xd7   :  { %3859 = vmatpush3.bf16.msra.mxu1 %v3085_v15  ;;  %v3091_v15 = vcombine.low %v1450_v10, %v1451_v11  ;;  %v1798_v10 = vld [vmem:[#allocation5 + $0x21c] sm:$0xf] }
  0xd8   :  { %3860 = vmatprep.subr.bf16.mxu1 %v4273_v0 }
  0xd9   :  { %3841 = vmatpush3.bf16.msra.mxu0 %v3074_v12  ;;  %v3103_v12 = vcombine.low %v1569_v7, %v1570_v8  ;;  %v1681_v7 = vld [vmem:[#allocation5 + $0x158] sm:$0xf] }
  0xda   :  { %3842 = vmatprep.subr.bf16.mxu0 %v4273_v0 }
  0xdb   :  { %3861 = vmatpush3.bf16.msra.mxu1 %v3084_v21  ;;  %v3090_v21 = vcombine.low %v1448_v16, %v1449_v17  ;;  %v1796_v16 = vld [vmem:[#allocation5 + $0x15c] sm:$0xf] }
  0xdc   :  { %3862 = vmatprep.subr.bf16.mxu1 %v4273_v0 }
  0xdd   :  { %3843 = vmatpush3.bf16.msra.mxu0 %v3073_v18  ;;  %v3102_v18 = vcombine.low %v1567_v13, %v1568_v14  ;;  %v1679_v13 = vld [vmem:[#allocation5 + $0x98] sm:$0xf] }
  0xde   :  { %3844 = vmatprep.subr.bf16.mxu0 %v4273_v0 }
  0xdf   :  { %3863 = vmatpush3.bf16.msra.mxu1 %v3083_v27  ;;  %v3117_v27 = vcombine.low %v1692_v22, %v1693_v23  ;;  %v1794_v22 = vld [vmem:[#allocation5 + $0x9c] sm:$0xf] }
  0xe0   :  { %3864 = vmatprep.subr.bf16.mxu1 %v4273_v0 }
  0xe1   :  { %3845 = vmatpush3.bf16.msra.mxu0 %v3072_v24  ;;  %v3101_v24 = vcombine.low %v1565_v19, %v1566_v20  ;;  %v1923_v19 = vld [vmem:[#allocation5 + $0x5e0] sm:$0xf] }
  0xe2   :  { %3846 = vmatprep.subr.bf16.mxu0 %v4273_v0 }
  0xe3   :  { %3865 = vmatpush3.bf16.msra.mxu1 %v3082_v33 }
  0xe4   :  { %3866 = vmatprep.subr.bf16.mxu1 %v4273_v0 }
  0xe5   :  { %3847 = vmatpush3.bf16.msra.mxu0 %v3071_v30  ;;  %v3100_v30 = vcombine.low %v1563_v25, %v1564_v26  ;;  %v1921_v25 = vld [vmem:[#allocation5 + $0x520] sm:$0xf] }
  0xe6   :  { %3848 = vmatprep.subr.bf16.mxu0 %v4273_v0 }
  0xe7   :  { %3867 = vmatpush3.bf16.msra.mxu1 %v3081_v39  ;;  %v3127_v39 = vcombine.low %v1807_v31, %v1808_v32  ;;  %v1918_v32 = vld [vmem:[#allocation5 + $0x400] sm:$0xf] }
  0xe8   :  { %3868 = vmatprep.subr.bf16.mxu1 %v4273_v0 }
  0xe9   :  { %3849 = vmatpush3.bf16.msra.mxu0 %v3070_v36 }
  0xea   :  { %3874 = vmatprep.subr.bf16.mxu0 %v4273_v0 }
  0xeb   :  { %3869 = vmatpush3.bf16.msra.mxu1 %v3080_v45 }
  0xec   :  { %3851 = vmatmul.mubr.bf16.vlgmr.msra.gmra.mxu0 %v4338_v50  ;;  %3894 = vmatprep.subr.bf16.mxu1 %v4273_v0 }
  0xed   :  { %3875 = vmatpush3.bf16.msra.mxu0 %v3097_v42  ;;  %3890 = vmatprep.mubr.msk.bf16.mxu0 %vm4274_vm0, %v4273_v0 }
  0xee   :  { %3876 = vmatprep.subr.bf16.mxu0 %v4273_v0  ;;  %3871 = vmatmul.mubr.bf16.vlgmr.msra.gmra.mxu1 %v4338_v50  ;;  %v3105_v50 = vcombine.low %v1573_v59, %v1574_v60 }
  0xef   :  { %3895 = vmatpush3.bf16.msra.mxu1 %v3107_v52  ;;  %3910 = vmatprep.mubr.msk.bf16.mxu1 %vm4274_vm0, %v4273_v0  ;;  %v1803_v52 = vld [vmem:[#allocation5 + $0x3fc] sm:$0xf] }
  0xf0   :  { %3896 = vmatprep.subr.bf16.mxu1 %v4273_v0  ;;  %v3125_v59 = vcombine.low %v1803_v52, %v1804_v53  ;;  %v1914_v52 = vld [vmem:[#allocation5 + $0x280] sm:$0xf] }
  0xf1   :  { %3877 = vmatpush3.bf16.msra.mxu0 %v3096_v48  ;;  %v1687_v48 = vld [vmem:[#allocation5 + $0x398] sm:$0xf]  ;;  %v1915_v53 = vld [vmem:[#allocation5 + $0x2e0] sm:$0xf] }
  0xf2   :  { %3878 = vmatprep.subr.bf16.mxu0 %v4273_v0  ;;  %v3114_v54 = vcombine.low %v1686_v47, %v1687_v48  ;;  %v2033_v47 = vld [vmem:[#allocation5 + $0x404] sm:$0xf] }
  0xf3   :  { %3897 = vmatpush3.bf16.msra.mxu1 %v3106_v58  ;;  %v2034_v48 = vld [vmem:[#allocation5 + $0x464] sm:$0xf] }
  0xf4   :  { %3898 = vmatprep.subr.bf16.mxu1 %v4273_v0 }
  0xf5   :  { %3879 = vmatpush3.bf16.msra.mxu0 %v3095_v55 }
  0xf6   :  { %3880 = vmatprep.subr.bf16.mxu0 %v4273_v0 }
  0xf7   :  { %3899 = vmatpush3.bf16.msra.mxu1 %v3105_v50  ;;  %v1682_v50 = vld [vmem:[#allocation5 + $0x1b8] sm:$0xf] }
  0xf8   :  { %3900 = vmatprep.subr.bf16.mxu1 %v4273_v0  ;;  %v3112_v5 = vcombine.low %v1682_v50, %v1683_v1  ;;  %v2030_v50 = vld [vmem:[#allocation5 + $0x2e4] sm:$0xf] }
  0xf9   :  { %3881 = vmatpush3.bf16.msra.mxu0 %v3094_v61  ;;  %v1801_v61 = vld [vmem:[#allocation5 + $0x33c] sm:$0xf] }
  0xfa   :  { %3882 = vmatprep.subr.bf16.mxu0 %v4273_v0  ;;  %v3124_v2 = vcombine.low %v1801_v61, %v1802_v62  ;;  %v1913_v61 = vld [vmem:[#allocation5 + $0x220] sm:$0xf] }
  0xfb   :  { %3901 = vmatpush3.bf16.msra.mxu1 %v3104_v6  ;;  %v1680_v6 = vld [vmem:[#allocation5 + $0xf8] sm:$0xf] }
  0xfc   :  { %3902 = vmatprep.subr.bf16.mxu1 %v4273_v0  ;;  %v3111_v11 = vcombine.low %v1680_v6, %v1681_v7  ;;  %v2028_v6 = vld [vmem:[#allocation5 + $0x224] sm:$0xf] }
  0xfd   :  { %3883 = vmatpush3.bf16.msra.mxu0 %v3093_v3  ;;  %v1799_v3 = vld [vmem:[#allocation5 + $0x27c] sm:$0xf] }
  0xfe   :  { %3884 = vmatprep.subr.bf16.mxu0 %v4273_v0  ;;  %v3123_v8 = vcombine.low %v1799_v3, %v1800_v4  ;;  %v1911_v3 = vld [vmem:[#allocation5 + $0x160] sm:$0xf] }
  0xff   :  { %3903 = vmatpush3.bf16.msra.mxu1 %v3103_v12  ;;  %v1678_v12 = vld [vmem:[#allocation5 + $0x38] sm:$0xf] }
 0x100   :  { %3904 = vmatprep.subr.bf16.mxu1 %v4273_v0  ;;  %v3110_v17 = vcombine.low %v1678_v12, %v1679_v13  ;;  %v2026_v12 = vld [vmem:[#allocation5 + $0x164] sm:$0xf] }
 0x101   :  { %3885 = vmatpush3.bf16.msra.mxu0 %v3092_v9  ;;  %v1797_v9 = vld [vmem:[#allocation5 + $0x1bc] sm:$0xf] }
 0x102   :  { %3886 = vmatprep.subr.bf16.mxu0 %v4273_v0  ;;  %v3122_v14 = vcombine.low %v1797_v9, %v1798_v10  ;;  %v1909_v9 = vld [vmem:[#allocation5 + $0xa0] sm:$0xf] }
 0x103   :  { %3905 = vmatpush3.bf16.msra.mxu1 %v3102_v18  ;;  %v1922_v18 = vld [vmem:[#allocation5 + $0x580] sm:$0xf] }
 0x104   :  { %3906 = vmatprep.subr.bf16.mxu1 %v4273_v0  ;;  %v3137_v23 = vcombine.low %v1922_v18, %v1923_v19  ;;  %v2024_v18 = vld [vmem:[#allocation5 + $0xa4] sm:$0xf] }
 0x105   :  { %3887 = vmatpush3.bf16.msra.mxu0 %v3091_v15  ;;  %v1795_v15 = vld [vmem:[#allocation5 + $0xfc] sm:$0xf] }
 0x106   :  { %3888 = vmatprep.subr.bf16.mxu0 %v4273_v0  ;;  %v3121_v20 = vcombine.low %v1795_v15, %v1796_v16  ;;  %v2153_v15 = vld [vmem:[#allocation5 + $0x5e8] sm:$0xf] }
 0x107   :  { %3907 = vmatpush3.bf16.msra.mxu1 %v3101_v24  ;;  %v1920_v24 = vld [vmem:[#allocation5 + $0x4c0] sm:$0xf] }
 0x108   :  { %3908 = vmatprep.subr.bf16.mxu1 %v4273_v0 }
 0x109   :  { %3889 = vmatpush3.bf16.msra.mxu0 %v3090_v21  ;;  %v1793_v21 = vld [vmem:[#allocation5 + $0x3c] sm:$0xf] }
 0x10a   :  { %3914 = vmatprep.subr.bf16.mxu0 %v4273_v0  ;;  %v3120_v26 = vcombine.low %v1793_v21, %v1794_v22  ;;  %v2151_v21 = vld [vmem:[#allocation5 + $0x528] sm:$0xf] }
 0x10b   :  { %3909 = vmatpush3.bf16.msra.mxu1 %v3100_v30  ;;  %v3136_v30 = vcombine.low %v1920_v24, %v1921_v25  ;;  %v2268_v24 = vld [vmem:[#allocation5 + $0x5ec] sm:$0xf] }
 0x10c   :  { %v166_v33 = vpop.f32.mrf.mxu0  ;;  %3891 = vmatmul.mubr.bf16.vlgmr.msra.gmra.mxu0 %v4474_v34  ;;  %3934 = vmatprep.subr.bf16.mxu1 %v4273_v0 }
 0x10d   :  { %3915 = vmatpush3.bf16.msra.mxu0 %v3117_v27  ;;  %3930 = vmatprep.mubr.msk.bf16.mxu0 %vm4274_vm0, %v4273_v0  ;;  %v2037_v27 = vld [vmem:[#allocation5 + $0x584] sm:$0xf] }
 0x10e   :  { %v3652_v36 = vpop.f32.mrf.mxu0  ;;  %3916 = vmatprep.subr.bf16.mxu0 %v4273_v0  ;;  %v281_v45 = vpop.f32.mrf.mxu1  ;;  %3911 = vmatmul.mubr.bf16.vlgmr.msra.gmra.mxu1 %v4474_v34 }
 0x10f   :  { %3935 = vmatpush3.bf16.msra.mxu1 %v3127_v39  ;;  %3950 = vmatprep.mubr.msk.bf16.mxu1 %vm4274_vm0, %v4273_v0  ;;  %v2035_v36 = vld [vmem:[#allocation5 + $0x4c4] sm:$0xf] }
 0x110   :  { %v169_v42 = vpop.f32.mrf.mxu0  ;;  %v3672_v51 = vpop.f32.mrf.mxu1  ;;  %3936 = vmatprep.subr.bf16.mxu1 %v4273_v0 }
 0x111   :  { %v3269_v43 = vpack.c.bf16 %v169_v42, %v166_v33  ;;  %3917 = vmatpush3.bf16.msra.mxu0 %v3116_v35  ;;  %v1919_v33 = vld [vmem:[#allocation5 + $0x460] sm:$0xf]  ;;  %v3147_v35 = vcombine.low %v2037_v27, %v2038_v28  ;;  %v2148_v28 = vld [vmem:[#allocation5 + $0x408] sm:$0xf] }
 0x112   :  { %v3653_v46 = vpop.f32.mrf.mxu0  ;;  %3918 = vmatprep.subr.bf16.mxu0 %v4273_v0  ;;  %v284_v55 = vpop.f32.mrf.mxu1  ;;  %v3135_v40 = vcombine.low %v1918_v32, %v1919_v33  ;;  %v2266_v32 = vld [vmem:[#allocation5 + $0x52c] sm:$0xf] }
 0x113   :  { %3270 = vst [vmem:[#allocation8] sm:$0xff] %v3269_v43   ;;  %v3274_v58 = vpack.c.bf16 %v284_v55, %v281_v45  ;;  %3937 = vmatpush3.bf16.msra.mxu1 %v3126_v49  ;;  %v1916_v43 = vld [vmem:[#allocation5 + $0x340] sm:$0xf]  ;;  %v3146_v45 = vcombine.low %v2035_v36, %v2036_v37  ;;  %v3145_v55 = vcombine.low %v2033_v47, %v2034_v48  ;;  %v2144_v47 = vld [vmem:[#allocation5 + $0x288] sm:$0xf] }
 0x114   :  { %v3673_v60 = vpop.f32.mrf.mxu1  ;;  %3938 = vmatprep.subr.bf16.mxu1 %v4273_v0  ;;  %v2145_v48 = vld [vmem:[#allocation5 + $0x2e8] sm:$0xf] }
 0x115   :  { %3919 = vmatpush3.bf16.msra.mxu0 %v3115_v44  ;;  %3386 = vst [vmem:[#allocation8 + $0x8] sm:$0xff] %v3274_v58   ;;  %v1917_v44 = vld [vmem:[#allocation5 + $0x3a0] sm:$0xf]  ;;  %v2032_v58 = vld [vmem:[#allocation5 + $0x3a4] sm:$0xf] }
 0x116   :  { %3920 = vmatprep.subr.bf16.mxu0 %v4273_v0  ;;  %v3134_v49 = vcombine.low %v1916_v43, %v1917_v44  ;;  %v1912_v60 = vld [vmem:[#allocation5 + $0x1c0] sm:$0xf]  ;;  %v3144_v62 = vcombine.low %v2031_v57, %v2032_v58  ;;  %v2263_v43 = vld [vmem:[#allocation5 + $0x40c] sm:$0xf]  ;;  %v2143_v57 = vld [vmem:[#allocation5 + $0x228] sm:$0xf] }
 0x117   :  { %3939 = vmatpush3.bf16.msra.mxu1 %v3125_v59  ;;  %v3133_v59 = vcombine.low %v1914_v52, %v1915_v53  ;;  %v3132_v1 = vcombine.low %v1912_v60, %v1913_v61  ;;  %v2264_v44 = vld [vmem:[#allocation5 + $0x46c] sm:$0xf] }
 0x118   :  { %3940 = vmatprep.subr.bf16.mxu1 %v4273_v0  ;;  %v2261_v53 = vld [vmem:[#allocation5 + $0x34c] sm:$0xf] }
 0x119   :  { %3921 = vmatpush3.bf16.msra.mxu0 %v3114_v54  ;;  %v2260_v60 = vld [vmem:[#allocation5 + $0x2ec] sm:$0xf] }
 0x11a   :  { %3922 = vmatprep.subr.bf16.mxu0 %v4273_v0 }
 0x11b   :  { %3941 = vmatpush3.bf16.msra.mxu1 %v3124_v2  ;;  %v1910_v2 = vld [vmem:[#allocation5 + $0x100] sm:$0xf] }
 0x11c   :  { %3942 = vmatprep.subr.bf16.mxu1 %v4273_v0  ;;  %v3131_v7 = vcombine.low %v1910_v2, %v1911_v3  ;;  %v2258_v2 = vld [vmem:[#allocation5 + $0x22c] sm:$0xf] }
 0x11d   :  { %3923 = vmatpush3.bf16.msra.mxu0 %v3113_v63  ;;  %v2029_v63 = vld [vmem:[#allocation5 + $0x284] sm:$0xf] }
 0x11e   :  { %3924 = vmatprep.subr.bf16.mxu0 %v4273_v0  ;;  %v3143_v4 = vcombine.low %v2029_v63, %v2030_v50  ;;  %v2141_v63 = vld [vmem:[#allocation5 + $0x168] sm:$0xf] }
 0x11f   :  { %3943 = vmatpush3.bf16.msra.mxu1 %v3123_v8  ;;  %v1908_v8 = vld [vmem:[#allocation5 + $0x40] sm:$0xf] }
 0x120   :  { %3944 = vmatprep.subr.bf16.mxu1 %v4273_v0  ;;  %v3130_v13 = vcombine.low %v1908_v8, %v1909_v9  ;;  %v2256_v8 = vld [vmem:[#allocation5 + $0x16c] sm:$0xf] }
 0x121   :  { %3925 = vmatpush3.bf16.msra.mxu0 %v3112_v5  ;;  %v2027_v5 = vld [vmem:[#allocation5 + $0x1c4] sm:$0xf] }
 0x122   :  { %3926 = vmatprep.subr.bf16.mxu0 %v4273_v0  ;;  %v3142_v10 = vcombine.low %v2027_v5, %v2028_v6  ;;  %v2139_v5 = vld [vmem:[#allocation5 + $0xa8] sm:$0xf] }
 0x123   :  { %3945 = vmatpush3.bf16.msra.mxu1 %v3122_v14  ;;  %v2152_v14 = vld [vmem:[#allocation5 + $0x588] sm:$0xf] }
 0x124   :  { %3946 = vmatprep.subr.bf16.mxu1 %v4273_v0  ;;  %v3157_v19 = vcombine.low %v2152_v14, %v2153_v15  ;;  %v2254_v14 = vld [vmem:[#allocation5 + $0xac] sm:$0xf] }
 0x125   :  { %3927 = vmatpush3.bf16.msra.mxu0 %v3111_v11  ;;  %v2025_v11 = vld [vmem:[#allocation5 + $0x104] sm:$0xf] }
 0x126   :  { %3928 = vmatprep.subr.bf16.mxu0 %v4273_v0  ;;  %v3141_v16 = vcombine.low %v2025_v11, %v2026_v12  ;;  %v2383_v11 = vld [vmem:[#allocation5 + $0x5f0] sm:$0xf] }
 0x127   :  { %3947 = vmatpush3.bf16.msra.mxu1 %v3121_v20  ;;  %v2150_v20 = vld [vmem:[#allocation5 + $0x4c8] sm:$0xf] }
 0x128   :  { %3948 = vmatprep.subr.bf16.mxu1 %v4273_v0 }
 0x129   :  { %3929 = vmatpush3.bf16.msra.mxu0 %v3110_v17  ;;  %v2023_v17 = vld [vmem:[#allocation5 + $0x44] sm:$0xf] }
 0x12a   :  { %3954 = vmatprep.subr.bf16.mxu0 %v4273_v0  ;;  %v3140_v22 = vcombine.low %v2023_v17, %v2024_v18  ;;  %v2381_v17 = vld [vmem:[#allocation5 + $0x530] sm:$0xf] }
 0x12b   :  { %3949 = vmatpush3.bf16.msra.mxu1 %v3120_v26  ;;  %v3156_v26 = vcombine.low %v2150_v20, %v2151_v21  ;;  %v2498_v20 = vld [vmem:[#allocation5 + $0x5f4] sm:$0xf] }
 0x12c   :  { %v396_v29 = vpop.f32.mrf.mxu0  ;;  %3931 = vmatmul.mubr.bf16.vlgmr.msra.gmra.mxu0 %v4474_v34  ;;  %3974 = vmatprep.subr.bf16.mxu1 %v4273_v0 }
 0x12d   :  { %3955 = vmatpush3.bf16.msra.mxu0 %v3137_v23  ;;  %3970 = vmatprep.mubr.msk.bf16.mxu0 %vm4274_vm0, %v4273_v0  ;;  %v2267_v23 = vld [vmem:[#allocation5 + $0x58c] sm:$0xf] }
 0x12e   :  { %v3692_v31 = vpop.f32.mrf.mxu0  ;;  %3956 = vmatprep.subr.bf16.mxu0 %v4273_v0  ;;  %v511_v41 = vpop.f32.mrf.mxu1  ;;  %3951 = vmatmul.mubr.bf16.vlgmr.msra.gmra.mxu1 %v4474_v34 }
 0x12f   :  { %3975 = vmatpush3.bf16.msra.mxu1 %v3147_v35  ;;  %3990 = vmatprep.mubr.msk.bf16.mxu1 %vm4274_vm0, %v4273_v0  ;;  %v2265_v31 = vld [vmem:[#allocation5 + $0x4cc] sm:$0xf] }
 0x130   :  { %v399_v38 = vpop.f32.mrf.mxu0  ;;  %v3712_v46 = vpop.f32.mrf.mxu1  ;;  %3976 = vmatprep.subr.bf16.mxu1 %v4273_v0 }
 0x131   :  { %v3279_v39 = vpack.c.bf16 %v399_v38, %v396_v29  ;;  %3957 = vmatpush3.bf16.msra.mxu0 %v3136_v30  ;;  %v2149_v29 = vld [vmem:[#allocation5 + $0x468] sm:$0xf]  ;;  %v3167_v30 = vcombine.low %v2267_v23, %v2268_v24  ;;  %v2378_v24 = vld [vmem:[#allocation5 + $0x410] sm:$0xf] }
 0x132   :  { %v3693_v42 = vpop.f32.mrf.mxu0  ;;  %3958 = vmatprep.subr.bf16.mxu0 %v4273_v0  ;;  %v514_v51 = vpop.f32.mrf.mxu1  ;;  %v3155_v36 = vcombine.low %v2148_v28, %v2149_v29  ;;  %v2496_v28 = vld [vmem:[#allocation5 + $0x534] sm:$0xf] }
 0x133   :  { %3387 = vst [vmem:[#allocation8 + $0x10] sm:$0xff] %v3279_v39   ;;  %v3284_v54 = vpack.c.bf16 %v514_v51, %v511_v41  ;;  %3977 = vmatpush3.bf16.msra.mxu1 %v3146_v45  ;;  %v2146_v39 = vld [vmem:[#allocation5 + $0x348] sm:$0xf]  ;;  %v3166_v41 = vcombine.low %v2265_v31, %v2266_v32  ;;  %v3165_v51 = vcombine.low %v2263_v43, %v2264_v44  ;;  %v2374_v43 = vld [vmem:[#allocation5 + $0x290] sm:$0xf] }
 0x134   :  { %v3713_v56 = vpop.f32.mrf.mxu1  ;;  %3978 = vmatprep.subr.bf16.mxu1 %v4273_v0  ;;  %v2375_v44 = vld [vmem:[#allocation5 + $0x2f0] sm:$0xf] }
 0x135   :  { %3959 = vmatpush3.bf16.msra.mxu0 %v3135_v40  ;;  %3388 = vst [vmem:[#allocation8 + $0x18] sm:$0xff] %v3284_v54   ;;  %v2147_v40 = vld [vmem:[#allocation5 + $0x3a8] sm:$0xf]  ;;  %v2262_v54 = vld [vmem:[#allocation5 + $0x3ac] sm:$0xf] }
 0x136   :  { %3960 = vmatprep.subr.bf16.mxu0 %v4273_v0  ;;  %v3154_v45 = vcombine.low %v2146_v39, %v2147_v40  ;;  %v2142_v56 = vld [vmem:[#allocation5 + $0x1c8] sm:$0xf]  ;;  %v3164_v58 = vcombine.low %v2261_v53, %v2262_v54  ;;  %v2493_v39 = vld [vmem:[#allocation5 + $0x414] sm:$0xf]  ;;  %v2373_v53 = vld [vmem:[#allocation5 + $0x230] sm:$0xf] }
 0x137   :  { %3979 = vmatpush3.bf16.msra.mxu1 %v3145_v55  ;;  %v3153_v55 = vcombine.low %v2144_v47, %v2145_v48  ;;  %v3152_v61 = vcombine.low %v2142_v56, %v2143_v57  ;;  %v2494_v40 = vld [vmem:[#allocation5 + $0x474] sm:$0xf] }
 0x138   :  { %3980 = vmatprep.subr.bf16.mxu1 %v4273_v0  ;;  %v2491_v48 = vld [vmem:[#allocation5 + $0x354] sm:$0xf] }
 0x139   :  { %3961 = vmatpush3.bf16.msra.mxu0 %v3134_v49  ;;  %v2490_v56 = vld [vmem:[#allocation5 + $0x2f4] sm:$0xf] }
 0x13a   :  { %3962 = vmatprep.subr.bf16.mxu0 %v4273_v0 }
 0x13b   :  { %3981 = vmatpush3.bf16.msra.mxu1 %v3144_v62  ;;  %v2140_v62 = vld [vmem:[#allocation5 + $0x108] sm:$0xf] }
 0x13c   :  { %3982 = vmatprep.subr.bf16.mxu1 %v4273_v0  ;;  %v3151_v3 = vcombine.low %v2140_v62, %v2141_v63  ;;  %v2488_v62 = vld [vmem:[#allocation5 + $0x234] sm:$0xf] }
 0x13d   :  { %3963 = vmatpush3.bf16.msra.mxu0 %v3133_v59  ;;  %v2259_v59 = vld [vmem:[#allocation5 + $0x28c] sm:$0xf] }
 0x13e   :  { %3964 = vmatprep.subr.bf16.mxu0 %v4273_v0  ;;  %v3163_v50 = vcombine.low %v2259_v59, %v2260_v60  ;;  %v2371_v59 = vld [vmem:[#allocation5 + $0x170] sm:$0xf] }
 0x13f   :  { %3983 = vmatpush3.bf16.msra.mxu1 %v3143_v4  ;;  %v2138_v4 = vld [vmem:[#allocation5 + $0x48] sm:$0xf] }
 0x140   :  { %3984 = vmatprep.subr.bf16.mxu1 %v4273_v0  ;;  %v3150_v9 = vcombine.low %v2138_v4, %v2139_v5  ;;  %v2486_v4 = vld [vmem:[#allocation5 + $0x174] sm:$0xf] }
 0x141   :  { %3965 = vmatpush3.bf16.msra.mxu0 %v3132_v1  ;;  %v2257_v1 = vld [vmem:[#allocation5 + $0x1cc] sm:$0xf] }
 0x142   :  { %3966 = vmatprep.subr.bf16.mxu0 %v4273_v0  ;;  %v3162_v6 = vcombine.low %v2257_v1, %v2258_v2  ;;  %v2369_v1 = vld [vmem:[#allocation5 + $0xb0] sm:$0xf] }
 0x143   :  { %3985 = vmatpush3.bf16.msra.mxu1 %v3142_v10  ;;  %v2382_v10 = vld [vmem:[#allocation5 + $0x590] sm:$0xf] }
 0x144   :  { %3986 = vmatprep.subr.bf16.mxu1 %v4273_v0  ;;  %v3177_v15 = vcombine.low %v2382_v10, %v2383_v11  ;;  %v2484_v10 = vld [vmem:[#allocation5 + $0xb4] sm:$0xf] }
 0x145   :  { %3967 = vmatpush3.bf16.msra.mxu0 %v3131_v7  ;;  %v2255_v7 = vld [vmem:[#allocation5 + $0x10c] sm:$0xf] }
 0x146   :  { %3968 = vmatprep.subr.bf16.mxu0 %v4273_v0  ;;  %v3161_v12 = vcombine.low %v2255_v7, %v2256_v8  ;;  %v2613_v7 = vld [vmem:[#allocation5 + $0x5f8] sm:$0xf] }
 0x147   :  { %3987 = vmatpush3.bf16.msra.mxu1 %v3141_v16  ;;  %v2380_v16 = vld [vmem:[#allocation5 + $0x4d0] sm:$0xf] }
 0x148   :  { %3988 = vmatprep.subr.bf16.mxu1 %v4273_v0 }
 0x149   :  { %3969 = vmatpush3.bf16.msra.mxu0 %v3130_v13  ;;  %v2253_v13 = vld [vmem:[#allocation5 + $0x4c] sm:$0xf] }
 0x14a   :  { %3994 = vmatprep.subr.bf16.mxu0 %v4273_v0  ;;  %v3160_v18 = vcombine.low %v2253_v13, %v2254_v14  ;;  %v2611_v13 = vld [vmem:[#allocation5 + $0x538] sm:$0xf] }
 0x14b   :  { %3989 = vmatpush3.bf16.msra.mxu1 %v3140_v22  ;;  %v3176_v22 = vcombine.low %v2380_v16, %v2381_v17  ;;  %v2728_v16 = vld [vmem:[#allocation5 + $0x5fc] sm:$0xf] }
 0x14c   :  { %v626_v25 = vpop.f32.mrf.mxu0  ;;  %3971 = vmatmul.mubr.bf16.vlgmr.msra.gmra.mxu0 %v4474_v34  ;;  %4014 = vmatprep.subr.bf16.mxu1 %v4273_v0 }
 0x14d   :  { %3995 = vmatpush3.bf16.msra.mxu0 %v3157_v19  ;;  %4010 = vmatprep.mubr.msk.bf16.mxu0 %vm4274_vm0, %v4273_v0  ;;  %v2497_v19 = vld [vmem:[#allocation5 + $0x594] sm:$0xf] }
 0x14e   :  { %v3732_v27 = vpop.f32.mrf.mxu0  ;;  %3996 = vmatprep.subr.bf16.mxu0 %v4273_v0  ;;  %v741_v37 = vpop.f32.mrf.mxu1  ;;  %3991 = vmatmul.mubr.bf16.vlgmr.msra.gmra.mxu1 %v4474_v34 }
 0x14f   :  { %4015 = vmatpush3.bf16.msra.mxu1 %v3167_v30  ;;  %4030 = vmatprep.mubr.msk.bf16.mxu1 %vm4274_vm0, %v4273_v0  ;;  %v2495_v27 = vld [vmem:[#allocation5 + $0x4d4] sm:$0xf] }
 0x150   :  { %v629_v33 = vpop.f32.mrf.mxu0  ;;  %v3752_v42 = vpop.f32.mrf.mxu1  ;;  %4016 = vmatprep.subr.bf16.mxu1 %v4273_v0 }
 0x151   :  { %v3289_v35 = vpack.c.bf16 %v629_v33, %v626_v25  ;;  %3997 = vmatpush3.bf16.msra.mxu0 %v3156_v26  ;;  %v2379_v25 = vld [vmem:[#allocation5 + $0x470] sm:$0xf]  ;;  %v3187_v26 = vcombine.low %v2497_v19, %v2498_v20  ;;  %v2608_v20 = vld [vmem:[#allocation5 + $0x418] sm:$0xf] }
 0x152   :  { %v3733_v38 = vpop.f32.mrf.mxu0  ;;  %3998 = vmatprep.subr.bf16.mxu0 %v4273_v0  ;;  %v744_v46 = vpop.f32.mrf.mxu1  ;;  %v3175_v31 = vcombine.low %v2378_v24, %v2379_v25  ;;  %v2726_v24 = vld [vmem:[#allocation5 + $0x53c] sm:$0xf] }
 0x153   :  { %3389 = vst [vmem:[#allocation8 + $0x20] sm:$0xff] %v3289_v35   ;;  %v3294_v49 = vpack.c.bf16 %v744_v46, %v741_v37  ;;  %4017 = vmatpush3.bf16.msra.mxu1 %v3166_v41  ;;  %v2376_v35 = vld [vmem:[#allocation5 + $0x350] sm:$0xf]  ;;  %v3186_v37 = vcombine.low %v2495_v27, %v2496_v28  ;;  %v3185_v46 = vcombine.low %v2493_v39, %v2494_v40  ;;  %v2604_v39 = vld [vmem:[#allocation5 + $0x298] sm:$0xf] }
 0x154   :  { %v3753_v52 = vpop.f32.mrf.mxu1  ;;  %4018 = vmatprep.subr.bf16.mxu1 %v4273_v0  ;;  %v2605_v40 = vld [vmem:[#allocation5 + $0x2f8] sm:$0xf] }
 0x155   :  { %3999 = vmatpush3.bf16.msra.mxu0 %v3155_v36  ;;  %3390 = vst [vmem:[#allocation8 + $0x28] sm:$0xff] %v3294_v49   ;;  %v2377_v36 = vld [vmem:[#allocation5 + $0x3b0] sm:$0xf]  ;;  %v2492_v49 = vld [vmem:[#allocation5 + $0x3b4] sm:$0xf] }
 0x156   :  { %4000 = vmatprep.subr.bf16.mxu0 %v4273_v0  ;;  %v3174_v41 = vcombine.low %v2376_v35, %v2377_v36  ;;  %v2372_v52 = vld [vmem:[#allocation5 + $0x1d0] sm:$0xf]  ;;  %v3184_v54 = vcombine.low %v2491_v48, %v2492_v49  ;;  %v2723_v35 = vld [vmem:[#allocation5 + $0x41c] sm:$0xf]  ;;  %v2603_v48 = vld [vmem:[#allocation5 + $0x238] sm:$0xf] }
 0x157   :  { %4019 = vmatpush3.bf16.msra.mxu1 %v3165_v51  ;;  %v3173_v51 = vcombine.low %v2374_v43, %v2375_v44  ;;  %v3172_v57 = vcombine.low %v2372_v52, %v2373_v53  ;;  %v2724_v36 = vld [vmem:[#allocation5 + $0x47c] sm:$0xf] }
 0x158   :  { %4020 = vmatprep.subr.bf16.mxu1 %v4273_v0  ;;  %v2721_v44 = vld [vmem:[#allocation5 + $0x35c] sm:$0xf] }
 0x159   :  { %4001 = vmatpush3.bf16.msra.mxu0 %v3154_v45  ;;  %v2720_v52 = vld [vmem:[#allocation5 + $0x2fc] sm:$0xf] }
 0x15a   :  { %4002 = vmatprep.subr.bf16.mxu0 %v4273_v0 }
 0x15b   :  { %4021 = vmatpush3.bf16.msra.mxu1 %v3164_v58  ;;  %v2370_v58 = vld [vmem:[#allocation5 + $0x110] sm:$0xf] }
 0x15c   :  { %4022 = vmatprep.subr.bf16.mxu1 %v4273_v0  ;;  %v3171_v63 = vcombine.low %v2370_v58, %v2371_v59  ;;  %v2718_v58 = vld [vmem:[#allocation5 + $0x23c] sm:$0xf] }
 0x15d   :  { %4003 = vmatpush3.bf16.msra.mxu0 %v3153_v55  ;;  %v2489_v55 = vld [vmem:[#allocation5 + $0x294] sm:$0xf] }
 0x15e   :  { %4004 = vmatprep.subr.bf16.mxu0 %v4273_v0  ;;  %v3183_v60 = vcombine.low %v2489_v55, %v2490_v56  ;;  %v2601_v55 = vld [vmem:[#allocation5 + $0x178] sm:$0xf] }
 0x15f   :  { %4023 = vmatpush3.bf16.msra.mxu1 %v3163_v50  ;;  %v2368_v50 = vld [vmem:[#allocation5 + $0x50] sm:$0xf] }
 0x160   :  { %4024 = vmatprep.subr.bf16.mxu1 %v4273_v0  ;;  %v3170_v5 = vcombine.low %v2368_v50, %v2369_v1  ;;  %v2716_v50 = vld [vmem:[#allocation5 + $0x17c] sm:$0xf] }
 0x161   :  { %4005 = vmatpush3.bf16.msra.mxu0 %v3152_v61  ;;  %v2487_v61 = vld [vmem:[#allocation5 + $0x1d4] sm:$0xf] }
 0x162   :  { %4006 = vmatprep.subr.bf16.mxu0 %v4273_v0  ;;  %v3182_v2 = vcombine.low %v2487_v61, %v2488_v62  ;;  %v2599_v61 = vld [vmem:[#allocation5 + $0xb8] sm:$0xf] }
 0x163   :  { %4025 = vmatpush3.bf16.msra.mxu1 %v3162_v6  ;;  %v2612_v6 = vld [vmem:[#allocation5 + $0x598] sm:$0xf] }
 0x164   :  { %4026 = vmatprep.subr.bf16.mxu1 %v4273_v0  ;;  %v3197_v11 = vcombine.low %v2612_v6, %v2613_v7 }
 0x165   :  { %4007 = vmatpush3.bf16.msra.mxu0 %v3151_v3  ;;  %v2485_v3 = vld [vmem:[#allocation5 + $0x114] sm:$0xf] }
 0x166   :  { %4008 = vmatprep.subr.bf16.mxu0 %v4273_v0  ;;  %v3181_v8 = vcombine.low %v2485_v3, %v2486_v4  ;;  %v2713_v3 = vld [vmem:[#allocation5 + $0x5c] sm:$0xf] }
 0x167   :  { %4027 = vmatpush3.bf16.msra.mxu1 %v3161_v12  ;;  %v2610_v12 = vld [vmem:[#allocation5 + $0x4d8] sm:$0xf]  ;;  %v2714_v4 = vld [vmem:[#allocation5 + $0xbc] sm:$0xf] }
 0x168   :  { %4028 = vmatprep.subr.bf16.mxu1 %v4273_v0  ;;  %v3200_v6 = vcombine.low %v2713_v3, %v2714_v4 }
 0x169   :  { %4009 = vmatpush3.bf16.msra.mxu0 %v3150_v9  ;;  %v2483_v9 = vld [vmem:[#allocation5 + $0x54] sm:$0xf] }
 0x16a   :  { %4034 = vmatprep.subr.bf16.mxu0 %v4273_v0  ;;  %v3180_v14 = vcombine.low %v2483_v9, %v2484_v10 }
 0x16b   :  { %4029 = vmatpush3.bf16.msra.mxu1 %v3160_v18  ;;  %v3196_v18 = vcombine.low %v2610_v12, %v2611_v13  ;;  %v4150_v12 = vld [vmem:[#allocation7 + $0x28] sm:$0xff]  }
 0x16c   :  { %v856_v21 = vpop.f32.mrf.mxu0  ;;  %4011 = vmatmul.mubr.bf16.vlgmr.msra.gmra.mxu0 %v4474_v34  ;;  %4054 = vmatprep.subr.bf16.mxu1 %v4273_v0 }
 0x16d   :  { %4035 = vmatpush3.bf16.msra.mxu0 %v3177_v15  ;;  %4050 = vmatprep.mubr.msk.bf16.mxu0 %vm4274_vm0, %v4273_v0  ;;  %v2727_v15 = vld [vmem:[#allocation5 + $0x59c] sm:$0xf] }
 0x16e   :  { %v3772_v23 = vpop.f32.mrf.mxu0  ;;  %4036 = vmatprep.subr.bf16.mxu0 %v4273_v0  ;;  %v971_v32 = vpop.f32.mrf.mxu1  ;;  %4031 = vmatmul.mubr.bf16.vlgmr.msra.gmra.mxu1 %v4474_v34 }
 0x16f   :  { %4055 = vmatpush3.bf16.msra.mxu1 %v3187_v26  ;;  %4070 = vmatprep.mubr.msk.bf16.mxu1 %vm4274_vm0, %v4273_v0  ;;  %v2725_v23 = vld [vmem:[#allocation5 + $0x4dc] sm:$0xf] }
 0x170   :  { %v859_v29 = vpop.f32.mrf.mxu0  ;;  %v3792_v38 = vpop.f32.mrf.mxu1  ;;  %4056 = vmatprep.subr.bf16.mxu1 %v4273_v0 }
 0x171   :  { %v3299_v30 = vpack.c.bf16 %v859_v29, %v856_v21  ;;  %4037 = vmatpush3.bf16.msra.mxu0 %v3176_v22  ;;  %v2609_v21 = vld [vmem:[#allocation5 + $0x478] sm:$0xf]  ;;  %v3207_v22 = vcombine.low %v2727_v15, %v2728_v16  ;;  %v4151_v16 = vld [vmem:[#allocation7 + $0x20] sm:$0xff]  }
 0x172   :  { %v3773_v33 = vpop.f32.mrf.mxu0  ;;  %4038 = vmatprep.subr.bf16.mxu0 %v4273_v0  ;;  %v974_v42 = vpop.f32.mrf.mxu1  ;;  %v3195_v27 = vcombine.low %v2608_v20, %v2609_v21  ;;  %v4152_v20 = vld [vmem:[#allocation7 + $0x18] sm:$0xff]   ;;  %v4154_v21 = vld [vmem:[#allocation7 + $0x8] sm:$0xff]  }
 0x173   :  { %3391 = vst [vmem:[#allocation8 + $0x30] sm:$0xff] %v3299_v30   ;;  %v3304_v45 = vpack.c.bf16 %v974_v42, %v971_v32  ;;  %4057 = vmatpush3.bf16.msra.mxu1 %v3186_v37  ;;  %v2606_v30 = vld [vmem:[#allocation5 + $0x358] sm:$0xf]  ;;  %v3206_v32 = vcombine.low %v2725_v23, %v2726_v24  ;;  %v3205_v42 = vcombine.low %v2723_v35, %v2724_v36 }
 0x174   :  { %v3793_v47 = vpop.f32.mrf.mxu1  ;;  %4058 = vmatprep.subr.bf16.mxu1 %v4273_v0  ;;  %v4157_v24 = vld [vmem:[#allocation2] sm:$0xff]  }
 0x175   :  { %4039 = vmatpush3.bf16.msra.mxu0 %v3175_v31  ;;  %3392 = vst [vmem:[#allocation8 + $0x38] sm:$0xff] %v3304_v45   ;;  %v2607_v31 = vld [vmem:[#allocation5 + $0x3b8] sm:$0xf]  ;;  %v2722_v45 = vld [vmem:[#allocation5 + $0x3bc] sm:$0xf] }
 0x176   :  { %4040 = vmatprep.subr.bf16.mxu0 %v4273_v0  ;;  %v3194_v37 = vcombine.low %v2606_v30, %v2607_v31  ;;  %v2602_v47 = vld [vmem:[#allocation5 + $0x1d8] sm:$0xf]  ;;  %v3204_v49 = vcombine.low %v2721_v44, %v2722_v45 }
 0x177   :  { %4059 = vmatpush3.bf16.msra.mxu1 %v3185_v46  ;;  %v3193_v46 = vcombine.low %v2604_v39, %v2605_v40  ;;  %v3192_v53 = vcombine.low %v2602_v47, %v2603_v48 }
 0x178   :  { %4060 = vmatprep.subr.bf16.mxu1 %v4273_v0 }
 0x179   :  { %4041 = vmatpush3.bf16.msra.mxu0 %v3174_v41 }
 0x17a   :  { %4042 = vmatprep.subr.bf16.mxu0 %v4273_v0 }
 0x17b   :  { %4061 = vmatpush3.bf16.msra.mxu1 %v3184_v54  ;;  %v2600_v54 = vld [vmem:[#allocation5 + $0x118] sm:$0xf] }
 0x17c   :  { %4062 = vmatprep.subr.bf16.mxu1 %v4273_v0  ;;  %v3191_v59 = vcombine.low %v2600_v54, %v2601_v55 }
 0x17d   :  { %4043 = vmatpush3.bf16.msra.mxu0 %v3173_v51  ;;  %v2719_v51 = vld [vmem:[#allocation5 + $0x29c] sm:$0xf] }
 0x17e   :  { %4044 = vmatprep.subr.bf16.mxu0 %v4273_v0  ;;  %v3203_v56 = vcombine.low %v2719_v51, %v2720_v52 }
 0x17f   :  { %4063 = vmatpush3.bf16.msra.mxu1 %v3183_v60  ;;  %v2598_v60 = vld [vmem:[#allocation5 + $0x58] sm:$0xf] }
 0x180   :  { %4064 = vmatprep.subr.bf16.mxu1 %v4273_v0  ;;  %v3190_v1 = vcombine.low %v2598_v60, %v2599_v61 }
 0x181   :  { %4045 = vmatpush3.bf16.msra.mxu0 %v3172_v57  ;;  %v2717_v57 = vld [vmem:[#allocation5 + $0x1dc] sm:$0xf] }
 0x182   :  { %4046 = vmatprep.subr.bf16.mxu0 %v4273_v0  ;;  %v3202_v62 = vcombine.low %v2717_v57, %v2718_v58 }
 0x183   :  { %4065 = vmatpush3.bf16.msra.mxu1 %v3182_v2 }
 0x184   :  { %4066 = vmatprep.subr.bf16.mxu1 %v4273_v0 }
 0x185   :  { %4047 = vmatpush3.bf16.msra.mxu0 %v3171_v63  ;;  %v2715_v63 = vld [vmem:[#allocation5 + $0x11c] sm:$0xf] }
 0x186   :  { %4048 = vmatprep.subr.bf16.mxu0 %v4273_v0  ;;  %v3201_v2 = vcombine.low %v2715_v63, %v2716_v50 }
 0x187   :  { %4067 = vmatpush3.bf16.msra.mxu1 %v3181_v8  ;;  %v4149_v8 = vld [vmem:[#allocation7 + $0x30] sm:$0xff]  }
 0x188   :  { %4068 = vmatprep.subr.bf16.mxu1 %v4273_v0 }
 0x189   :  { %4049 = vmatpush3.bf16.msra.mxu0 %v3170_v5  ;;  %v4148_v5 = vld [vmem:[#allocation7 + $0x38] sm:$0xff]  }
 0x18a   :  { %4074 = vmatprep.subr.bf16.mxu0 %v4273_v0 }
 0x18b   :  { %4069 = vmatpush3.bf16.msra.mxu1 %v3180_v14 }
 0x18c   :  { %v1086_v17 = vpop.f32.mrf.mxu0  ;;  %4051 = vmatmul.mubr.bf16.vlgmr.msra.gmra.mxu0 %v4474_v34  ;;  %4094 = vmatprep.subr.bf16.mxu1 %v4273_v0 }
 0x18d   :  { %4075 = vmatpush3.bf16.msra.mxu0 %v3197_v11  ;;  %4090 = vmatprep.mubr.msk.bf16.mxu0 %vm4274_vm0, %v4273_v0 }
 0x18e   :  { %v3812_v19 = vpop.f32.mrf.mxu0  ;;  %4076 = vmatprep.subr.bf16.mxu0 %v4273_v0  ;;  %v1201_v28 = vpop.f32.mrf.mxu1  ;;  %4071 = vmatmul.mubr.bf16.vlgmr.msra.gmra.mxu1 %v4474_v34 }
 0x18f   :  { %4095 = vmatpush3.bf16.msra.mxu1 %v3207_v22  ;;  %4110 = vmatprep.mubr.msk.bf16.mxu1 %vm4274_vm0, %v4273_v0  ;;  %v4155_v22 = vld [vmem:[#allocation7] sm:$0xff]  }
 0x190   :  { %v1089_v25 = vpop.f32.mrf.mxu0  ;;  %v3832_v33 = vpop.f32.mrf.mxu1  ;;  %4096 = vmatprep.subr.bf16.mxu1 %v4273_v0 }
 0x191   :  { %v3309_v26 = vpack.c.bf16 %v1089_v25, %v1086_v17  ;;  %4077 = vmatpush3.bf16.msra.mxu0 %v3196_v18 }
 0x192   :  { %v3813_v29 = vpop.f32.mrf.mxu0  ;;  %4078 = vmatprep.subr.bf16.mxu0 %v4273_v0  ;;  %v1204_v38 = vpop.f32.mrf.mxu1 }
 0x193   :  { %3393 = vst [vmem:[#allocation8 + $0x40] sm:$0xff] %v3309_v26   ;;  %v3314_v41 = vpack.c.bf16 %v1204_v38, %v1201_v28  ;;  %4097 = vmatpush3.bf16.msra.mxu1 %v3206_v32 }
 0x194   :  { %v3833_v43 = vpop.f32.mrf.mxu1  ;;  %4098 = vmatprep.subr.bf16.mxu1 %v4273_v0 }
 0x195   :  { %4079 = vmatpush3.bf16.msra.mxu0 %v3195_v27  ;;  %3394 = vst [vmem:[#allocation8 + $0x48] sm:$0xff] %v3314_v41  }
 0x196   :  { %4080 = vmatprep.subr.bf16.mxu0 %v4273_v0 }
 0x197   :  { %4099 = vmatpush3.bf16.msra.mxu1 %v3205_v42 }
 0x198   :  { %4100 = vmatprep.subr.bf16.mxu1 %v4273_v0 }
 0x199   :  { %4081 = vmatpush3.bf16.msra.mxu0 %v3194_v37 }
 0x19a   :  { %4082 = vmatprep.subr.bf16.mxu0 %v4273_v0 }
 0x19b   :  { %4101 = vmatpush3.bf16.msra.mxu1 %v3204_v49 }
 0x19c   :  { %4102 = vmatprep.subr.bf16.mxu1 %v4273_v0 }
 0x19d   :  { %4083 = vmatpush3.bf16.msra.mxu0 %v3193_v46 }
 0x19e   :  { %4084 = vmatprep.subr.bf16.mxu0 %v4273_v0 }
 0x19f   :  { %4103 = vmatpush3.bf16.msra.mxu1 %v3203_v56 }
 0x1a0   :  { %4104 = vmatprep.subr.bf16.mxu1 %v4273_v0 }
 0x1a1   :  { %4085 = vmatpush3.bf16.msra.mxu0 %v3192_v53 }
 0x1a2   :  { %4086 = vmatprep.subr.bf16.mxu0 %v4273_v0 }
 0x1a3   :  { %4105 = vmatpush3.bf16.msra.mxu1 %v3202_v62 }
 0x1a4   :  { %4106 = vmatprep.subr.bf16.mxu1 %v4273_v0 }
 0x1a5   :  { %4087 = vmatpush3.bf16.msra.mxu0 %v3191_v59 }
 0x1a6   :  { %4088 = vmatprep.subr.bf16.mxu0 %v4273_v0 }
 0x1a7   :  { %4107 = vmatpush3.bf16.msra.mxu1 %v3201_v2 }
 0x1a8   :  { %4108 = vmatprep.subr.bf16.mxu1 %v4273_v0 }
 0x1a9   :  { %4089 = vmatpush3.bf16.msra.mxu0 %v3190_v1 }
 0x1aa   :  { %4114 = vmatprep.subr.bf16.mxu0 %v4273_v0 }
 0x1ab   :  { %4109 = vmatpush3.bf16.msra.mxu1 %v3200_v6 }
 0x1ac   :  { %v1316_v7 = vpop.f32.mrf.mxu0  ;;  %4091 = vmatmul.mubr.bf16.vlgmr.msra.gmra.mxu0 %v4474_v34 }
 0x1ad   :  { %4115 = vmatpush3.bf16.msra.mxu0 %v4148_v5  ;;  %4130 = vmatprep.mubr.msk.bf16.mxu0 %vm4274_vm0, %v4273_v0 }
 0x1ae   :  { %v3852_v9 = vpop.f32.mrf.mxu0  ;;  %4116 = vmatprep.subr.bf16.mxu0 %v4273_v0  ;;  %4111 = vmatmul.mubr.bf16.vlgmr.msra.gmra.mxu1 %v4474_v34  ;;  %v1431_v13 = vpop.f32.mrf.mxu1  ;;  %v4153_v34 = vld [vmem:[#allocation7 + $0x10] sm:$0xff]  }
 0x1b0   :  { %v1319_v10 = vpop.f32.mrf.mxu0  ;;  %v3872_v15 = vpop.f32.mrf.mxu1 }
 0x1b1   :  { %v3319_v11 = vpack.c.bf16 %v1319_v10, %v1316_v7  ;;  %4117 = vmatpush3.bf16.msra.mxu0 %v4149_v8 }
 0x1b2   :  { %v3853_v14 = vpop.f32.mrf.mxu0  ;;  %4118 = vmatprep.subr.bf16.mxu0 %v4273_v0  ;;  %v1434_v17 = vpop.f32.mrf.mxu1 }
 0x1b3   :  { %3395 = vst [vmem:[#allocation8 + $0x50] sm:$0xff] %v3319_v11   ;;  %v3324_v18 = vpack.c.bf16 %v1434_v17, %v1431_v13 }
 0x1b4   :  { %v3873_v19 = vpop.f32.mrf.mxu1 }
 0x1b5   :  { %4119 = vmatpush3.bf16.msra.mxu0 %v4150_v12  ;;  %3396 = vst [vmem:[#allocation8 + $0x58] sm:$0xff] %v3324_v18  }
 0x1b6   :  { %4120 = vmatprep.subr.bf16.mxu0 %v4273_v0 }
 0x1b9   :  { %4121 = vmatpush3.bf16.msra.mxu0 %v4151_v16 }
 0x1ba   :  { %4122 = vmatprep.subr.bf16.mxu0 %v4273_v0 }
 0x1bd   :  { %4123 = vmatpush3.bf16.msra.mxu0 %v4152_v20 }
 0x1be   :  { %4124 = vmatprep.subr.bf16.mxu0 %v4273_v0 }
 0x1c1   :  { %4125 = vmatpush3.bf16.msra.mxu0 %v4153_v34 }
 0x1c2   :  { %4126 = vmatprep.subr.bf16.mxu0 %v4273_v0 }
 0x1c5   :  { %4127 = vmatpush3.bf16.msra.mxu0 %v4154_v21 }
 0x1c6   :  { %4128 = vmatprep.subr.bf16.mxu0 %v4273_v0 }
 0x1c9   :  { %4129 = vmatpush3.bf16.msra.mxu0 %v4155_v22 }
 0x1cc   :  { %v1546_v23 = vpop.f32.mrf.mxu0  ;;  %4131 = vmatmul.mubr.bf16.vlgmr.msra.gmra.mxu0 %v4157_v24 }
 0x1ce   :  { %v3892_v25 = vpop.f32.mrf.mxu0  ;;  %v1661_v28 = vpop.f32.mrf.mxu1 }
 0x1d0   :  { %v1549_v26 = vpop.f32.mrf.mxu0  ;;  %v3912_v30 = vpop.f32.mrf.mxu1 }
 0x1d1   :  { %v3329_v27 = vpack.c.bf16 %v1549_v26, %v1546_v23 }
 0x1d2   :  { %v3893_v29 = vpop.f32.mrf.mxu0  ;;  %v1664_v31 = vpop.f32.mrf.mxu1 }
 0x1d3   :  { %3397 = vst [vmem:[#allocation8 + $0x60] sm:$0xff] %v3329_v27   ;;  %v3334_v32 = vpack.c.bf16 %v1664_v31, %v1661_v28 }
 0x1d4   :  { %v3913_v33 = vpop.f32.mrf.mxu1 }
 0x1d5   :  { %3398 = vst [vmem:[#allocation8 + $0x68] sm:$0xff] %v3334_v32  }
 0x1ec   :  { %v1776_v35 = vpop.f32.mrf.mxu0 }
 0x1ee   :  { %v3932_v36 = vpop.f32.mrf.mxu0  ;;  %v1891_v0 = vpop.f32.mrf.mxu1 }
 0x1f0   :  { %v1779_v37 = vpop.f32.mrf.mxu0  ;;  %v3952_v40 = vpop.f32.mrf.mxu1 }
 0x1f1   :  { %v3339_v38 = vpack.c.bf16 %v1779_v37, %v1776_v35 }
 0x1f2   :  { %v3933_v39 = vpop.f32.mrf.mxu0  ;;  %v1894_v41 = vpop.f32.mrf.mxu1 }
 0x1f3   :  { %3399 = vst [vmem:[#allocation8 + $0x70] sm:$0xff] %v3339_v38   ;;  %v3344_v42 = vpack.c.bf16 %v1894_v41, %v1891_v0 }
 0x1f4   :  { %v3953_v43 = vpop.f32.mrf.mxu1 }
 0x1f5   :  { %3400 = vst [vmem:[#allocation8 + $0x78] sm:$0xff] %v3344_v42  }
 0x20c   :  { %v2006_v44 = vpop.f32.mrf.mxu0 }
 0x20e   :  { %v3972_v45 = vpop.f32.mrf.mxu0  ;;  %v2121_v48 = vpop.f32.mrf.mxu1 }
 0x210   :  { %v2009_v46 = vpop.f32.mrf.mxu0  ;;  %v3992_v51 = vpop.f32.mrf.mxu1 }
 0x211   :  { %v3349_v47 = vpack.c.bf16 %v2009_v46, %v2006_v44 }
 0x212   :  { %v3973_v49 = vpop.f32.mrf.mxu0  ;;  %v2124_v52 = vpop.f32.mrf.mxu1 }
 0x213   :  { %3401 = vst [vmem:[#allocation8 + $0x80] sm:$0xff] %v3349_v47   ;;  %v3354_v53 = vpack.c.bf16 %v2124_v52, %v2121_v48 }
 0x214   :  { %v3993_v54 = vpop.f32.mrf.mxu1 }
 0x215   :  { %3402 = vst [vmem:[#allocation8 + $0x88] sm:$0xff] %v3354_v53  }
 0x22c   :  { %v2236_v55 = vpop.f32.mrf.mxu0 }
 0x22e   :  { %v4012_v56 = vpop.f32.mrf.mxu0  ;;  %v2351_v59 = vpop.f32.mrf.mxu1 }
 0x230   :  { %v2239_v57 = vpop.f32.mrf.mxu0  ;;  %v4032_v61 = vpop.f32.mrf.mxu1 }
 0x231   :  { %v3359_v58 = vpack.c.bf16 %v2239_v57, %v2236_v55 }
 0x232   :  { %v4013_v60 = vpop.f32.mrf.mxu0  ;;  %v2354_v62 = vpop.f32.mrf.mxu1 }
 0x233   :  { %3403 = vst [vmem:[#allocation8 + $0x90] sm:$0xff] %v3359_v58   ;;  %v3364_v63 = vpack.c.bf16 %v2354_v62, %v2351_v59 }
 0x234   :  { %v4033_v50 = vpop.f32.mrf.mxu1 }
 0x235   :  { %3404 = vst [vmem:[#allocation8 + $0x98] sm:$0xff] %v3364_v63  }
 0x24c   :  { %v2466_v1 = vpop.f32.mrf.mxu0 }
 0x24e   :  { %v4052_v2 = vpop.f32.mrf.mxu0  ;;  %v2581_v5 = vpop.f32.mrf.mxu1 }
 0x250   :  { %v2469_v3 = vpop.f32.mrf.mxu0  ;;  %v4072_v7 = vpop.f32.mrf.mxu1 }
 0x251   :  { %v3369_v4 = vpack.c.bf16 %v2469_v3, %v2466_v1 }
 0x252   :  { %v4053_v6 = vpop.f32.mrf.mxu0  ;;  %v2584_v8 = vpop.f32.mrf.mxu1 }
 0x253   :  { %3405 = vst [vmem:[#allocation8 + $0xa0] sm:$0xff] %v3369_v4   ;;  %v3374_v9 = vpack.c.bf16 %v2584_v8, %v2581_v5 }
 0x254   :  { %v4073_v10 = vpop.f32.mrf.mxu1 }
 0x255   :  { %3406 = vst [vmem:[#allocation8 + $0xa8] sm:$0xff] %v3374_v9  }
 0x26c   :  { %v2696_v11 = vpop.f32.mrf.mxu0 }
 0x26e   :  { %v4092_v12 = vpop.f32.mrf.mxu0  ;;  %v2811_v15 = vpop.f32.mrf.mxu1 }
 0x270   :  { %v2699_v13 = vpop.f32.mrf.mxu0  ;;  %v4112_v17 = vpop.f32.mrf.mxu1 }
 0x271   :  { %v3379_v14 = vpack.c.bf16 %v2699_v13, %v2696_v11 }
 0x272   :  { %v4093_v16 = vpop.f32.mrf.mxu0  ;;  %v2814_v18 = vpop.f32.mrf.mxu1 }
 0x273   :  { %3407 = vst [vmem:[#allocation8 + $0xb0] sm:$0xff] %v3379_v14   ;;  %v3384_v19 = vpack.c.bf16 %v2814_v18, %v2811_v15 }
 0x274   :  { %v4113_v20 = vpop.f32.mrf.mxu1 }
 0x275   :  { %3408 = vst [vmem:[#allocation8 + $0xb8] sm:$0xff] %v3384_v19  }
 0x276   :  { %4229 = shalt.err (!%p4226_p5)
}
 0x277   :  { %2946 = dma.vmem_to_hbm [thread:$0]  %s2941_s2, 3072, %s4609_s3, [#allocation4], %s4270_s25, %s4270_s25, %s4271_s26  }
 0x278   :  { %s4276_s10 = smov [#allocation9]  }
 0x279   :  { %s2952_s11 = sshll.u32 %s4276_s10, 4  ;;  %s2953_s11 = int_to_ptr.vmem [resolvable:$true] %s2952_s11 }
 0x27a   :  { %s4238_s12 = scalar_lea.vmem %s2953_s11, 256  ;;  %p4243_p7 = scmp.lt.s32.totalorder %s2953_s11, %s2953_s11 }
 0x27b   :  { %p4239_p6 = scmp.ne.s32.totalorder %s2953_s11, %s4238_s12  ;;  %p4244_p8 = scmp.lt.s32.totalorder %s4238_s12, %s4238_s12 }
 0x27d   :  { %p4245_p9 = por %p4244_p8, %p4243_p7 }
 0x27f   :  { %p4246_p10 = pnand %p4245_p9, %p4239_p6 }
 0x28c   :  { %v2926_v34 = vpop.f32.mrf.mxu0 }
 0x28d   :  { %2933 = vst [vmem:[#allocation9] sm:$0xff] %v2926_v34 }
 0x28e   :  { %v4132_v21 = vpop.f32.mrf.mxu0 }
 0x290   :  { %v2929_v22 = vpop.f32.mrf.mxu0 }
 0x291   :  { %2934 = vst [vmem:[#allocation9 + $0x8] sm:$0xff] %v2929_v22 }
 0x292   :  { %v4133_v23 = vpop.f32.mrf.mxu0 }
 0x293   :  { %4249 = shalt.err (!%p4246_p10)
}
 0x294   :  { %s4277_s13 = smov 128   ;;  %s4278_s14 = smov 8  }
 0x295   :  { %2958 = dma.vmem_to_hbm [thread:$0]  %s2953_s11, 256, %s4610_s4, [#allocation10], %s4277_s13, %s4277_s13, %s4278_s14  }
 0x296   :  { %4262 = dma.done.wait [#allocation4], 3072  }
 0x297   :  { %4263 = vsyncadd [#allocation4], 4294964224 }
 0x298   :  { %4264 = dma.done.wait [#allocation10], 256  }
 0x299   :  { %4265 = vsyncadd [#allocation10], 4294967040 }
 0x29a   :  { %2965 = vsyncpa [#allocation3], 1 }
 0x29b   :  { %2966 = vsyncpa [#allocation6], 1 }
 0x29c   :  { %2967 = vsyncpa [#allocation4], 1 }
 0x29d   :  { %2968 = vsyncpa [#allocation10], 1 }

</bundles_post_ra>
